<compile_context>
chip_gen: v6e
topology: v6e:2x2x1
jax: 0.10.0
libtpu: 0.0.40
codegen_flags: <defaults>
</compile_context>

<pallas_src>
import math
import functools

import jax
import jax.numpy as jnp
from jax.experimental import pallas as pl
from jax.experimental.pallas import tpu as pltpu


def _round_up(x, m):
    return ((x + m - 1) // m) * m


_K1P = 16      # conv1 im2col contraction (9 taps, c_in=1) padded to 16
_EPS = 1e-12   # after_norm = torch.nn.LayerNorm(output_size, eps=1e-12)


# ------------------------------ fused kernel --------------------------------

def _encoder_kernel(p1_ref, w1_ref, b1_ref, w2_ref, b2_ref, wl_ref, bl_ref,
                    pe_ref, g_ref, be_ref, o_ref, y1_scr, h2_scr, *,
                    fq, tq, f2, t2p, c_pad, odim, scale, eps):
    """conv1 -> relu -> conv2 -> relu -> linear -> *sqrt(d)+PE -> LayerNorm.

    y1 (conv1 output) is stored parity-split as (4*fq, tq, c_pad):
    plane (pf*2 + pt)*fq + fi holds conv1 output freq (2*fi+pf), time (2*ti+pt)
    at row ti, so every 3x3 stride-2 conv2 tap is a contiguous slice.
    """
    # ---- conv1: one big matmul over every conv1 output position ------------
    y1 = jnp.dot(p1_ref[...], w1_ref[...], preferred_element_type=jnp.float32)
    y1 = jnp.maximum(y1 + b1_ref[...], 0.0).astype(jnp.bfloat16)
    y1_scr[...] = y1.reshape(4 * fq, tq, c_pad)

    # ---- conv2: 9 tap matmuls, each M = F2*T2p, K = N = C_pad ---------------
    acc2 = jnp.zeros((f2 * t2p, c_pad), jnp.float32)
    for kh in range(3):
        for kw in range(3):
            # freq = 2*f + kw  -> parity pf = kw%2, plane offset kw//2
            # time = 2*t + kh  -> parity pt = kh%2, row offset   kh//2
            plane0 = ((kw % 2) * 2 + (kh % 2)) * fq + kw // 2
            tap = y1_scr[pl.ds(plane0, f2), pl.ds(kh // 2, t2p), :]
            acc2 = acc2 + jnp.dot(tap.reshape(f2 * t2p, c_pad),
                                  w2_ref[kh * 3 + kw],
                                  preferred_element_type=jnp.float32)
    h2 = jnp.maximum(acc2 + b2_ref[...], 0.0).astype(jnp.bfloat16)

    # ---- gather per-freq rows into lane-offset slices -> (T2p, F2*C_pad) ---
    for f in range(f2):
        h2_scr[:, f * c_pad:(f + 1) * c_pad] = h2[f * t2p:(f + 1) * t2p, :]

    # ---- output linear: ONE dot with contraction depth F2*C_pad ------------
    x = jnp.dot(h2_scr[...], wl_ref[...], preferred_element_type=jnp.float32)
    x = (x + bl_ref[...]) * scale + pe_ref[...]          # PositionalEncoding

    # ---- after_norm: LayerNorm over the first `odim` lanes (masked) --------
    lane = jax.lax.broadcasted_iota(jnp.int32, x.shape, 1)
    valid = lane < odim
    inv_d = 1.0 / float(odim)
    mean = jnp.sum(jnp.where(valid, x, 0.0), axis=-1, keepdims=True) * inv_d
    cen = jnp.where(valid, x - mean, 0.0)
    var = jnp.sum(cen * cen, axis=-1, keepdims=True) * inv_d
    o_ref[...] = cen * jax.lax.rsqrt(var + eps) * g_ref[...] + be_ref[...]


def _fused_call(p1, w1, b1, w2, b2, wl, bl, pe, g, be, *,
                fq, tq, f2, t2p, c_pad, odim, scale):
    B, NR, K1P = p1.shape
    kern = functools.partial(_encoder_kernel, fq=fq, tq=tq, f2=f2, t2p=t2p,
                             c_pad=c_pad, odim=odim, scale=scale, eps=_EPS)
    return pl.pallas_call(
        kern,
        out_shape=jax.ShapeDtypeStruct((B, t2p, c_pad), jnp.float32),
        grid=(B,),
        in_specs=[
            pl.BlockSpec((None, NR, K1P), lambda b: (b, 0, 0)),
            pl.BlockSpec((K1P, c_pad), lambda b: (0, 0)),
            pl.BlockSpec((1, c_pad), lambda b: (0, 0)),
            pl.BlockSpec((9, c_pad, c_pad), lambda b: (0, 0, 0)),
            pl.BlockSpec((1, c_pad), lambda b: (0, 0)),
            pl.BlockSpec((f2 * c_pad, c_pad), lambda b: (0, 0)),
            pl.BlockSpec((1, c_pad), lambda b: (0, 0)),
            pl.BlockSpec((t2p, c_pad), lambda b: (0, 0)),     # pos-enc, shared
            pl.BlockSpec((1, c_pad), lambda b: (0, 0)),
            pl.BlockSpec((1, c_pad), lambda b: (0, 0)),
        ],
        out_specs=pl.BlockSpec((None, t2p, c_pad), lambda b: (b, 0, 0)),
        scratch_shapes=[
            pltpu.VMEM((4 * fq, tq, c_pad), jnp.bfloat16),    # y1 (parity-split)
            pltpu.VMEM((t2p, f2 * c_pad), jnp.bfloat16),      # h2 (concat over F2)
        ],
        compiler_params=pltpu.CompilerParams(
            dimension_semantics=("parallel",),
            vmem_limit_bytes=64 * 1024 * 1024),
    )(p1, w1, b1, w2, b2, wl, bl, pe, g, be)


# ------------------------------- JAX glue ------------------------------------

def _conv1_patches_parity(xs_pad, t1, f1, fq, tq):
    """conv1 (Conv2d(1, odim, 3, stride=2)) im2col taps for every conv1 output
    position, laid out parity-split so the kernel's conv2 taps are contiguous:
        row ((pf*2+pt)*fq + fi)*tq + ti  <->  conv1 output time 2*ti+pt,
                                              freq 2*fi+pf
    Out-of-range positions are zero-filled.  This runs once on the small raw
    input in XLA; everything downstream stays in VMEM inside the kernel."""
    B = xs_pad.shape[0]
    taps = []
    for kh in range(3):
        for kw in range(3):
            taps.append(xs_pad[:, kh:kh + 2 * t1 - 1:2, kw:kw + 2 * f1 - 1:2])
    patches = jnp.stack(taps, axis=-1)                       # (B, T1, F1, 9)
    out = jnp.zeros((B, 2, 2, fq, tq, _K1P), jnp.float32)
    for pf in range(2):
        for pt in range(2):
            blk = patches[:, pt::2, pf::2, :]                # (B, nt, nf, 9)
            nt = min(blk.shape[1], tq)
            nf = min(blk.shape[2], fq)
            out = out.at[:, pf, pt, :nf, :nt, :9].set(
                jnp.transpose(blk[:, :nt, :nf, :], (0, 2, 1, 3)))
    return out.reshape(B, 4 * fq * tq, _K1P).astype(jnp.bfloat16)


def _positional_encoding(length, d_model):
    pos = jnp.arange(length, dtype=jnp.float32)[:, None]
    div = jnp.exp(jnp.arange(0, d_model, 2, dtype=jnp.float32)
                  * -(math.log(10000.0) / d_model))
    pe = jnp.zeros((length, d_model), dtype=jnp.float32)
    pe = pe.at[:, 0::2].set(jnp.sin(pos * div))
    pe = pe.at[:, 1::2].set(jnp.cos(pos * div))
    return pe


def make_params(input_size, output_size, num_frames, key):
    """Deterministic init matching BaseEncoder(input_layer='conv2d'), built
    directly in the padded / lane-dense layouts used by the fused kernel.
    (The output-Linear weight is parameterized freq-major, an equivalent
    re-ordering of the PyTorch (c, f)-flattened Linear(odim*F2, odim).)"""
    odim = output_size
    c_pad = _round_up(odim, 128)       # real odim=256 configs give C_pad=256
    f1 = (input_size - 1) // 2
    f2 = (f1 - 1) // 2
    t1 = (num_frames - 1) // 2
    t2 = (t1 - 1) // 2
    t2p = _round_up(t2, 8)
    assert f2 >= 1 and t2 >= 1

    k = jax.random.split(key, 6)

    # conv1: Conv2d(1, odim, 3, 2) -> rows ordered (kh*3+kw), padded to 16.
    w1 = jnp.zeros((_K1P, c_pad), jnp.float32)
    w1 = w1.at[:9, :odim].set(0.05 * jax.random.normal(k[0], (9, odim)))
    b1 = jnp.zeros((1, c_pad), jnp.float32)
    b1 = b1.at[:, :odim].set(0.05 * jax.random.normal(k[1], (1, odim)))

    # conv2: Conv2d(odim, odim, 3, 2) -> one (c_in, c_out) matrix per tap.
    w2 = jnp.zeros((9, c_pad, c_pad), jnp.float32)
    w2 = w2.at[:, :odim, :odim].set(
        0.05 * jax.random.normal(k[2], (9, odim, odim)))
    b2 = jnp.zeros((1, c_pad), jnp.float32)
    b2 = b2.at[:, :odim].set(0.05 * jax.random.normal(k[3], (1, odim)))

    # output projection: Linear(odim * F2, odim), rows ordered (f, c).
    wl = jnp.zeros((f2, c_pad, c_pad), jnp.float32)
    wl = wl.at[:, :odim, :odim].set(
        0.05 * jax.random.normal(k[4], (f2, odim, odim)))
    wl = wl.reshape(f2 * c_pad, c_pad)
    bl = jnp.zeros((1, c_pad), jnp.float32)
    bl = bl.at[:, :odim].set(0.05 * jax.random.normal(k[5], (1, odim)))

    # after_norm LayerNorm(odim): gamma=1, beta=0 on real lanes, 0 on padding.
    gamma = jnp.zeros((1, c_pad), jnp.float32).at[:, :odim].set(1.0)
    beta = jnp.zeros((1, c_pad), jnp.float32)

    # positional-encoding table, precomputed once (hoisted out of forward).
    pe = jnp.zeros((t2p, c_pad), jnp.float32)
    pe = pe.at[:t2, :odim].set(_positional_encoding(t2, odim))

    return {
        "conv1_w": w1.astype(jnp.bfloat16), "conv1_b": b1,
        "conv2_w": w2.astype(jnp.bfloat16), "conv2_b": b2,
        "lin_w": wl.astype(jnp.bfloat16), "lin_b": bl,
        "ln_g": gamma, "ln_b": beta, "pe": pe,
    }


def base_encoder_forward(params, xs_pad, xs_lens, output_size):
    """Equivalent of BaseEncoder.forward (normalize_before=True, no dropout at
    inference, empty encoder-layer stack).  Returns (xs, masks)."""
    B, L, D = xs_pad.shape
    odim = output_size
    c_pad = params["ln_g"].shape[-1]
    t1, f1 = (L - 1) // 2, (D - 1) // 2
    t2, f2 = (t1 - 1) // 2, (f1 - 1) // 2
    t2p = _round_up(t2, 8)
    tq = t2p + 8                 # y1 time rows per parity (covers kh=2 shift)
    fq = f2 + 1                  # y1 freq planes per parity (covers kw=2 shift)

    # masks = ~make_pad_mask(xs_lens).unsqueeze(1), subsampled x4 as in
    # Conv2dSubsampling4 (x_mask[:, :, :-2:2][:, :, :-2:2]).
    idx = jnp.arange(L, dtype=jnp.int32)[None, :]
    masks = (idx < xs_lens.astype(jnp.int32)[:, None])[:, None, :]
    masks = masks[:, :, :-2:2][:, :, :-2:2]                  # (B, 1, T2)

    # conv1 im2col (tiny raw input), parity-split for in-kernel conv2 taps.
    p1 = _conv1_patches_parity(xs_pad, t1, f1, fq, tq)       # (B, 4*fq*tq, 16)

    # conv1+conv2+linear+PE+LayerNorm, one fused kernel; output lane-dense.
    xs = _fused_call(
        p1, params["conv1_w"], params["conv1_b"],
        params["conv2_w"], params["conv2_b"],
        params["lin_w"], params["lin_b"], params["pe"],
        params["ln_g"], params["ln_b"],
        fq=fq, tq=tq, f2=f2, t2p=t2p, c_pad=c_pad, odim=odim,
        scale=math.sqrt(float(odim)))                        # (B, T2p, C_pad)

    # Single un-padding slice at the very end of the model; downstream layers
    # could instead consume the padded lane-dense (T2p, C_pad) slab directly.
    xs = xs[:, :t2, :odim]

    # chunk_masks = add_optional_chunk_mask(...) == masks for the default
    # config; the encoder-layer loop is empty for the bare BaseEncoder.
    return xs, masks


if __name__ == "__main__":
    key = jax.random.PRNGKey(0)
    B, L, D = 2, 32, 16          # batch, frames, feature dim (input_size)
    OUT = 32                     # output_size

    k_in, k_par = jax.random.split(key)
    xs_pad = jax.random.normal(k_in, (B, L, D), jnp.float32)
    xs_lens = jnp.array([32, 25], dtype=jnp.int32)

    params = make_params(D, OUT, L, k_par)

    fwd = jax.jit(functools.partial(base_encoder_forward, output_size=OUT))
    xs, masks = fwd(params, xs_pad, xs_lens)
    jax.block_until_ready(xs)
    jax.block_until_ready(masks)

    T2 = (((L - 1) // 2 - 1) // 2)
    assert xs.shape == (B, T2, OUT), xs.shape
    assert masks.shape == (B, 1, T2), masks.shape
    assert bool(jnp.all(jnp.isfinite(xs)))
    print("KERNEL_OK")
</pallas_src>

<mosaic_0001>
module attributes {stable_mosaic.version = 11 : i64} {
  func.func @_encoder_kernel(%arg0: i32, %arg1: memref<1x256x16xbf16, #tpu.memory_space<vmem>>, %arg2: memref<16x128xbf16, #tpu.memory_space<vmem>>, %arg3: memref<1x128xf32, #tpu.memory_space<vmem>>, %arg4: memref<9x128x128xbf16, #tpu.memory_space<vmem>>, %arg5: memref<1x128xf32, #tpu.memory_space<vmem>>, %arg6: memref<384x128xbf16, #tpu.memory_space<vmem>>, %arg7: memref<1x128xf32, #tpu.memory_space<vmem>>, %arg8: memref<8x128xf32, #tpu.memory_space<vmem>>, %arg9: memref<1x128xf32, #tpu.memory_space<vmem>>, %arg10: memref<1x128xf32, #tpu.memory_space<vmem>>, %arg11: memref<1x8x128xf32, #tpu.memory_space<vmem>>, %arg12: memref<16x16x128xbf16, #tpu.memory_space<vmem>>, %arg13: memref<8x384xbf16, #tpu.memory_space<vmem>>) attributes {dimension_semantics = [#tpu.dimension_semantics<parallel>], iteration_bounds = array<i64: 2>, scalar_prefetch = 0 : i64, scratch_operands = 2 : i64, tpu.core_type = #tpu.core_type<tc>, window_params = [{transform_indices = @transform_0, window_bounds = array<i64: 1, 256, 16>}, {pipeline_mode = #tpu.pipeline_mode<synchronous>, transform_indices = @transform_1, window_bounds = array<i64: 16, 128>}, {pipeline_mode = #tpu.pipeline_mode<synchronous>, transform_indices = @transform_2, window_bounds = array<i64: 1, 128>}, {pipeline_mode = #tpu.pipeline_mode<synchronous>, transform_indices = @transform_3, window_bounds = array<i64: 9, 128, 128>}, {pipeline_mode = #tpu.pipeline_mode<synchronous>, transform_indices = @transform_4, window_bounds = array<i64: 1, 128>}, {pipeline_mode = #tpu.pipeline_mode<synchronous>, transform_indices = @transform_5, window_bounds = array<i64: 384, 128>}, {pipeline_mode = #tpu.pipeline_mode<synchronous>, transform_indices = @transform_6, window_bounds = array<i64: 1, 128>}, {pipeline_mode = #tpu.pipeline_mode<synchronous>, transform_indices = @transform_7, window_bounds = array<i64: 8, 128>}, {pipeline_mode = #tpu.pipeline_mode<synchronous>, transform_indices = @transform_8, window_bounds = array<i64: 1, 128>}, {pipeline_mode = #tpu.pipeline_mode<synchronous>, transform_indices = @transform_9, window_bounds = array<i64: 1, 128>}, {transform_indices = @transform_10, window_bounds = array<i64: 1, 8, 128>}]} {
    %c0 = arith.constant 0 : index
    %c0_0 = arith.constant 0 : index
    %c0_1 = arith.constant 0 : index
    %0 = vector.load %arg1[%c0, %c0_0, %c0_1] : memref<1x256x16xbf16, #tpu.memory_space<vmem>>, vector<1x256x16xbf16>
    %1 = vector.shape_cast %0 : vector<1x256x16xbf16> to vector<256x16xbf16>
    %c0_2 = arith.constant 0 : index
    %c0_3 = arith.constant 0 : index
    %2 = vector.load %arg2[%c0_2, %c0_3] : memref<16x128xbf16, #tpu.memory_space<vmem>>, vector<16x128xbf16>
    %cst = arith.constant dense<0.000000e+00> : vector<256x128xf32>
    %3 = tpu.matmul %1, %2, %cst {dimension_numbers = #tpu.dot_dimension_numbers<[1], [0], [0], [1], [0, 0, 1, 1], [], []>} : vector<256x16xbf16>, vector<16x128xbf16>, vector<256x128xf32> -> vector<256x128xf32>
    %c0_4 = arith.constant 0 : index
    %c0_5 = arith.constant 0 : index
    %4 = vector.load %arg3[%c0_4, %c0_5] : memref<1x128xf32, #tpu.memory_space<vmem>>, vector<1x128xf32>
    %5 = vector.broadcast %4 : vector<1x128xf32> to vector<256x128xf32>
    %6 = arith.addf %3, %5 : vector<256x128xf32>
    %cst_6 = arith.constant 0.000000e+00 : f32
    %7 = vector.broadcast %cst_6 : f32 to vector<256x128xf32>
    %8 = arith.maximumf %6, %7 : vector<256x128xf32>
    %9 = arith.truncf %8 : vector<256x128xf32> to vector<256x128xbf16>
    %10 = vector.shape_cast %9 : vector<256x128xbf16> to vector<16x16x128xbf16>
    %c0_7 = arith.constant 0 : index
    %c0_8 = arith.constant 0 : index
    %c0_9 = arith.constant 0 : index
    %11 = vector.load %arg12[%c0_7, %c0_8, %c0_9] : memref<16x16x128xbf16, #tpu.memory_space<vmem>>, vector<16x16x128xbf16>
    tpu.vector_store %arg12[%c0_7, %c0_8, %c0_9], %10 {strides = array<i32>} : memref<16x16x128xbf16, #tpu.memory_space<vmem>>, vector<16x16x128xbf16>,
    %cst_10 = arith.constant 0.000000e+00 : f32
    %12 = vector.broadcast %cst_10 : f32 to vector<24x128xf32>
    %c0_11 = arith.constant 0 : index
    %c0_12 = arith.constant 0 : index
    %c0_13 = arith.constant 0 : index
    %13 = vector.load %arg12[%c0_11, %c0_12, %c0_13] : memref<16x16x128xbf16, #tpu.memory_space<vmem>>, vector<3x8x128xbf16>
    %14 = vector.shape_cast %13 : vector<3x8x128xbf16> to vector<24x128xbf16>
    %c0_14 = arith.constant 0 : index
    %c0_15 = arith.constant 0 : index
    %c0_16 = arith.constant 0 : index
    %15 = vector.load %arg4[%c0_14, %c0_15, %c0_16] : memref<9x128x128xbf16, #tpu.memory_space<vmem>>, vector<1x128x128xbf16>
    %16 = vector.shape_cast %15 : vector<1x128x128xbf16> to vector<128x128xbf16>
    %cst_17 = arith.constant dense<0.000000e+00> : vector<24x128xf32>
    %17 = tpu.matmul %14, %16, %cst_17 {dimension_numbers = #tpu.dot_dimension_numbers<[1], [0], [0], [1], [0, 0, 1, 1], [], []>} : vector<24x128xbf16>, vector<128x128xbf16>, vector<24x128xf32> -> vector<24x128xf32>
    %18 = arith.addf %12, %17 : vector<24x128xf32>
    %c8 = arith.constant 8 : index
    %c0_18 = arith.constant 0 : index
    %c0_19 = arith.constant 0 : index
    %19 = vector.load %arg12[%c8, %c0_18, %c0_19] : memref<16x16x128xbf16, #tpu.memory_space<vmem>>, vector<3x8x128xbf16>
    %20 = vector.shape_cast %19 : vector<3x8x128xbf16> to vector<24x128xbf16>
    %c1 = arith.constant 1 : index
    %c0_20 = arith.constant 0 : index
    %c0_21 = arith.constant 0 : index
    %21 = vector.load %arg4[%c1, %c0_20, %c0_21] : memref<9x128x128xbf16, #tpu.memory_space<vmem>>, vector<1x128x128xbf16>
    %22 = vector.shape_cast %21 : vector<1x128x128xbf16> to vector<128x128xbf16>
    %cst_22 = arith.constant dense<0.000000e+00> : vector<24x128xf32>
    %23 = tpu.matmul %20, %22, %cst_22 {dimension_numbers = #tpu.dot_dimension_numbers<[1], [0], [0], [1], [0, 0, 1, 1], [], []>} : vector<24x128xbf16>, vector<128x128xbf16>, vector<24x128xf32> -> vector<24x128xf32>
    %24 = arith.addf %18, %23 : vector<24x128xf32>
    %c1_23 = arith.constant 1 : index
    %c0_24 = arith.constant 0 : index
    %c0_25 = arith.constant 0 : index
    %25 = vector.load %arg12[%c1_23, %c0_24, %c0_25] : memref<16x16x128xbf16, #tpu.memory_space<vmem>>, vector<3x8x128xbf16>
    %26 = vector.shape_cast %25 : vector<3x8x128xbf16> to vector<24x128xbf16>
    %c2 = arith.constant 2 : index
    %c0_26 = arith.constant 0 : index
    %c0_27 = arith.constant 0 : index
    %27 = vector.load %arg4[%c2, %c0_26, %c0_27] : memref<9x128x128xbf16, #tpu.memory_space<vmem>>, vector<1x128x128xbf16>
    %28 = vector.shape_cast %27 : vector<1x128x128xbf16> to vector<128x128xbf16>
    %cst_28 = arith.constant dense<0.000000e+00> : vector<24x128xf32>
    %29 = tpu.matmul %26, %28, %cst_28 {dimension_numbers = #tpu.dot_dimension_numbers<[1], [0], [0], [1], [0, 0, 1, 1], [], []>} : vector<24x128xbf16>, vector<128x128xbf16>, vector<24x128xf32> -> vector<24x128xf32>
    %30 = arith.addf %24, %29 : vector<24x128xf32>
    %c4 = arith.constant 4 : index
    %c0_29 = arith.constant 0 : index
    %c0_30 = arith.constant 0 : index
    %31 = vector.load %arg12[%c4, %c0_29, %c0_30] : memref<16x16x128xbf16, #tpu.memory_space<vmem>>, vector<3x8x128xbf16>
    %32 = vector.shape_cast %31 : vector<3x8x128xbf16> to vector<24x128xbf16>
    %c3 = arith.constant 3 : index
    %c0_31 = arith.constant 0 : index
    %c0_32 = arith.constant 0 : index
    %33 = vector.load %arg4[%c3, %c0_31, %c0_32] : memref<9x128x128xbf16, #tpu.memory_space<vmem>>, vector<1x128x128xbf16>
    %34 = vector.shape_cast %33 : vector<1x128x128xbf16> to vector<128x128xbf16>
    %cst_33 = arith.constant dense<0.000000e+00> : vector<24x128xf32>
    %35 = tpu.matmul %32, %34, %cst_33 {dimension_numbers = #tpu.dot_dimension_numbers<[1], [0], [0], [1], [0, 0, 1, 1], [], []>} : vector<24x128xbf16>, vector<128x128xbf16>, vector<24x128xf32> -> vector<24x128xf32>
    %36 = arith.addf %30, %35 : vector<24x128xf32>
    %c12 = arith.constant 12 : index
    %c0_34 = arith.constant 0 : index
    %c0_35 = arith.constant 0 : index
    %37 = vector.load %arg12[%c12, %c0_34, %c0_35] : memref<16x16x128xbf16, #tpu.memory_space<vmem>>, vector<3x8x128xbf16>
    %38 = vector.shape_cast %37 : vector<3x8x128xbf16> to vector<24x128xbf16>
    %c4_36 = arith.constant 4 : index
    %c0_37 = arith.constant 0 : index
    %c0_38 = arith.constant 0 : index
    %39 = vector.load %arg4[%c4_36, %c0_37, %c0_38] : memref<9x128x128xbf16, #tpu.memory_space<vmem>>, vector<1x128x128xbf16>
    %40 = vector.shape_cast %39 : vector<1x128x128xbf16> to vector<128x128xbf16>
    %cst_39 = arith.constant dense<0.000000e+00> : vector<24x128xf32>
    %41 = tpu.matmul %38, %40, %cst_39 {dimension_numbers = #tpu.dot_dimension_numbers<[1], [0], [0], [1], [0, 0, 1, 1], [], []>} : vector<24x128xbf16>, vector<128x128xbf16>, vector<24x128xf32> -> vector<24x128xf32>
    %42 = arith.addf %36, %41 : vector<24x128xf32>
    %c5 = arith.constant 5 : index
    %c0_40 = arith.constant 0 : index
    %c0_41 = arith.constant 0 : index
    %43 = vector.load %arg12[%c5, %c0_40, %c0_41] : memref<16x16x128xbf16, #tpu.memory_space<vmem>>, vector<3x8x128xbf16>
    %44 = vector.shape_cast %43 : vector<3x8x128xbf16> to vector<24x128xbf16>
    %c5_42 = arith.constant 5 : index
    %c0_43 = arith.constant 0 : index
    %c0_44 = arith.constant 0 : index
    %45 = vector.load %arg4[%c5_42, %c0_43, %c0_44] : memref<9x128x128xbf16, #tpu.memory_space<vmem>>, vector<1x128x128xbf16>
    %46 = vector.shape_cast %45 : vector<1x128x128xbf16> to vector<128x128xbf16>
    %cst_45 = arith.constant dense<0.000000e+00> : vector<24x128xf32>
    %47 = tpu.matmul %44, %46, %cst_45 {dimension_numbers = #tpu.dot_dimension_numbers<[1], [0], [0], [1], [0, 0, 1, 1], [], []>} : vector<24x128xbf16>, vector<128x128xbf16>, vector<24x128xf32> -> vector<24x128xf32>
    %48 = arith.addf %42, %47 : vector<24x128xf32>
    %c0_46 = arith.constant 0 : index
    %c1_47 = arith.constant 1 : index
    %c0_48 = arith.constant 0 : index
    %49 = vector.load %arg12[%c0_46, %c1_47, %c0_48] : memref<16x16x128xbf16, #tpu.memory_space<vmem>>, vector<3x8x128xbf16>
    %50 = vector.shape_cast %49 : vector<3x8x128xbf16> to vector<24x128xbf16>
    %c6 = arith.constant 6 : index
    %c0_49 = arith.constant 0 : index
    %c0_50 = arith.constant 0 : index
    %51 = vector.load %arg4[%c6, %c0_49, %c0_50] : memref<9x128x128xbf16, #tpu.memory_space<vmem>>, vector<1x128x128xbf16>
    %52 = vector.shape_cast %51 : vector<1x128x128xbf16> to vector<128x128xbf16>
    %cst_51 = arith.constant dense<0.000000e+00> : vector<24x128xf32>
    %53 = tpu.matmul %50, %52, %cst_51 {dimension_numbers = #tpu.dot_dimension_numbers<[1], [0], [0], [1], [0, 0, 1, 1], [], []>} : vector<24x128xbf16>, vector<128x128xbf16>, vector<24x128xf32> -> vector<24x128xf32>
    %54 = arith.addf %48, %53 : vector<24x128xf32>
    %c8_52 = arith.constant 8 : index
    %c1_53 = arith.constant 1 : index
    %c0_54 = arith.constant 0 : index
    %55 = vector.load %arg12[%c8_52, %c1_53, %c0_54] : memref<16x16x128xbf16, #tpu.memory_space<vmem>>, vector<3x8x128xbf16>
    %56 = vector.shape_cast %55 : vector<3x8x128xbf16> to vector<24x128xbf16>
    %c7 = arith.constant 7 : index
    %c0_55 = arith.constant 0 : index
    %c0_56 = arith.constant 0 : index
    %57 = vector.load %arg4[%c7, %c0_55, %c0_56] : memref<9x128x128xbf16, #tpu.memory_space<vmem>>, vector<1x128x128xbf16>
    %58 = vector.shape_cast %57 : vector<1x128x128xbf16> to vector<128x128xbf16>
    %cst_57 = arith.constant dense<0.000000e+00> : vector<24x128xf32>
    %59 = tpu.matmul %56, %58, %cst_57 {dimension_numbers = #tpu.dot_dimension_numbers<[1], [0], [0], [1], [0, 0, 1, 1], [], []>} : vector<24x128xbf16>, vector<128x128xbf16>, vector<24x128xf32> -> vector<24x128xf32>
    %60 = arith.addf %54, %59 : vector<24x128xf32>
    %c1_58 = arith.constant 1 : index
    %c1_59 = arith.constant 1 : index
    %c0_60 = arith.constant 0 : index
    %61 = vector.load %arg12[%c1_58, %c1_59, %c0_60] : memref<16x16x128xbf16, #tpu.memory_space<vmem>>, vector<3x8x128xbf16>
    %62 = vector.shape_cast %61 : vector<3x8x128xbf16> to vector<24x128xbf16>
    %c8_61 = arith.constant 8 : index
    %c0_62 = arith.constant 0 : index
    %c0_63 = arith.constant 0 : index
    %63 = vector.load %arg4[%c8_61, %c0_62, %c0_63] : memref<9x128x128xbf16, #tpu.memory_space<vmem>>, vector<1x128x128xbf16>
    %64 = vector.shape_cast %63 : vector<1x128x128xbf16> to vector<128x128xbf16>
    %cst_64 = arith.constant dense<0.000000e+00> : vector<24x128xf32>
    %65 = tpu.matmul %62, %64, %cst_64 {dimension_numbers = #tpu.dot_dimension_numbers<[1], [0], [0], [1], [0, 0, 1, 1], [], []>} : vector<24x128xbf16>, vector<128x128xbf16>, vector<24x128xf32> -> vector<24x128xf32>
    %66 = arith.addf %60, %65 : vector<24x128xf32>
    %c0_65 = arith.constant 0 : index
    %c0_66 = arith.constant 0 : index
    %67 = vector.load %arg5[%c0_65, %c0_66] : memref<1x128xf32, #tpu.memory_space<vmem>>, vector<1x128xf32>
    %68 = vector.broadcast %67 : vector<1x128xf32> to vector<24x128xf32>
    %69 = arith.addf %66, %68 : vector<24x128xf32>
    %cst_67 = arith.constant 0.000000e+00 : f32
    %70 = vector.broadcast %cst_67 : f32 to vector<24x128xf32>
    %71 = arith.maximumf %69, %70 : vector<24x128xf32>
    %72 = arith.truncf %71 : vector<24x128xf32> to vector<24x128xbf16>
    %73 = vector.extract_strided_slice %72 {offsets = [0, 0], sizes = [8, 128], strides = [1, 1]} : vector<24x128xbf16> to vector<8x128xbf16>
    %c0_68 = arith.constant 0 : index
    %c0_69 = arith.constant 0 : index
    %74 = vector.load %arg13[%c0_68, %c0_69] : memref<8x384xbf16, #tpu.memory_space<vmem>>, vector<8x128xbf16>
    tpu.vector_store %arg13[%c0_68, %c0_69], %73 {strides = array<i32>} : memref<8x384xbf16, #tpu.memory_space<vmem>>, vector<8x128xbf16>,
    %75 = vector.extract_strided_slice %72 {offsets = [8, 0], sizes = [8, 128], strides = [1, 1]} : vector<24x128xbf16> to vector<8x128xbf16>
    %c0_70 = arith.constant 0 : index
    %c128 = arith.constant 128 : index
    %76 = vector.load %arg13[%c0_70, %c128] : memref<8x384xbf16, #tpu.memory_space<vmem>>, vector<8x128xbf16>
    tpu.vector_store %arg13[%c0_70, %c128], %75 {strides = array<i32>} : memref<8x384xbf16, #tpu.memory_space<vmem>>, vector<8x128xbf16>,
    %77 = vector.extract_strided_slice %72 {offsets = [16, 0], sizes = [8, 128], strides = [1, 1]} : vector<24x128xbf16> to vector<8x128xbf16>
    %c0_71 = arith.constant 0 : index
    %c256 = arith.constant 256 : index
    %78 = vector.load %arg13[%c0_71, %c256] : memref<8x384xbf16, #tpu.memory_space<vmem>>, vector<8x128xbf16>
    tpu.vector_store %arg13[%c0_71, %c256], %77 {strides = array<i32>} : memref<8x384xbf16, #tpu.memory_space<vmem>>, vector<8x128xbf16>,
    %c0_72 = arith.constant 0 : index
    %c0_73 = arith.constant 0 : index
    %79 = vector.load %arg13[%c0_72, %c0_73] : memref<8x384xbf16, #tpu.memory_space<vmem>>, vector<8x384xbf16>
    %c0_74 = arith.constant 0 : index
    %c0_75 = arith.constant 0 : index
    %80 = vector.load %arg6[%c0_74, %c0_75] : memref<384x128xbf16, #tpu.memory_space<vmem>>, vector<384x128xbf16>
    %cst_76 = arith.constant dense<0.000000e+00> : vector<8x128xf32>
    %81 = tpu.matmul %79, %80, %cst_76 {dimension_numbers = #tpu.dot_dimension_numbers<[1], [0], [0], [1], [0, 0, 1, 1], [], []>} : vector<8x384xbf16>, vector<384x128xbf16>, vector<8x128xf32> -> vector<8x128xf32>
    %c0_77 = arith.constant 0 : index
    %c0_78 = arith.constant 0 : index
    %82 = vector.load %arg7[%c0_77, %c0_78] : memref<1x128xf32, #tpu.memory_space<vmem>>, vector<1x128xf32>
    %83 = vector.broadcast %82 : vector<1x128xf32> to vector<8x128xf32>
    %84 = arith.addf %81, %83 : vector<8x128xf32>
    %cst_79 = arith.constant 5.65685415 : f32
    %85 = vector.broadcast %cst_79 : f32 to vector<8x128xf32>
    %86 = arith.mulf %84, %85 : vector<8x128xf32>
    %c0_80 = arith.constant 0 : index
    %c0_81 = arith.constant 0 : index
    %87 = vector.load %arg8[%c0_80, %c0_81] : memref<8x128xf32, #tpu.memory_space<vmem>>, vector<8x128xf32>
    %88 = arith.addf %86, %87 : vector<8x128xf32>
    %89 = tpu.iota {dimensions = array<i32: 1>} : vector<8x128xi32>
    %c32_i32 = arith.constant 32 : i32
    %90 = vector.broadcast %c32_i32 : i32 to vector<8x128xi32>
    %91 = arith.cmpi slt, %89, %90 : vector<8x128xi32>
    %cst_82 = arith.constant 0.000000e+00 : f32
    %92 = vector.broadcast %cst_82 : f32 to vector<8x128xf32>
    %93 = arith.select %91, %88, %92 : vector<8x128xi1>, vector<8x128xf32>
    %cst_83 = arith.constant dense<0.000000e+00> : vector<8xf32>
    %94 = vector.multi_reduction <add>, %93, %cst_83 [1] : vector<8x128xf32> to vector<8xf32>
    %95 = vector.shape_cast %94 : vector<8xf32> to vector<8x1xf32>
    %cst_84 = arith.constant 3.125000e-02 : f32
    %96 = vector.broadcast %cst_84 : f32 to vector<8x1xf32>
    %97 = arith.mulf %95, %96 : vector<8x1xf32>
    %98 = vector.broadcast %97 : vector<8x1xf32> to vector<8x128xf32>
    %99 = arith.subf %88, %98 : vector<8x128xf32>
    %cst_85 = arith.constant 0.000000e+00 : f32
    %100 = vector.broadcast %cst_85 : f32 to vector<8x128xf32>
    %101 = arith.select %91, %99, %100 : vector<8x128xi1>, vector<8x128xf32>
    %102 = arith.mulf %101, %101 : vector<8x128xf32>
    %cst_86 = arith.constant dense<0.000000e+00> : vector<8xf32>
    %103 = vector.multi_reduction <add>, %102, %cst_86 [1] : vector<8x128xf32> to vector<8xf32>
    %104 = vector.shape_cast %103 : vector<8xf32> to vector<8x1xf32>
    %cst_87 = arith.constant 3.125000e-02 : f32
    %105 = vector.broadcast %cst_87 : f32 to vector<8x1xf32>
    %106 = arith.mulf %104, %105 : vector<8x1xf32>
    %cst_88 = arith.constant 9.99999996E-13 : f32
    %107 = vector.broadcast %cst_88 : f32 to vector<8x1xf32>
    %108 = arith.addf %106, %107 : vector<8x1xf32>
    %109 = math.rsqrt %108 : vector<8x1xf32>
    %110 = vector.broadcast %109 : vector<8x1xf32> to vector<8x128xf32>
    %111 = arith.mulf %101, %110 : vector<8x128xf32>
    %c0_89 = arith.constant 0 : index
    %c0_90 = arith.constant 0 : index
    %112 = vector.load %arg9[%c0_89, %c0_90] : memref<1x128xf32, #tpu.memory_space<vmem>>, vector<1x128xf32>
    %113 = vector.broadcast %112 : vector<1x128xf32> to vector<8x128xf32>
    %114 = arith.mulf %111, %113 : vector<8x128xf32>
    %c0_91 = arith.constant 0 : index
    %c0_92 = arith.constant 0 : index
    %115 = vector.load %arg10[%c0_91, %c0_92] : memref<1x128xf32, #tpu.memory_space<vmem>>, vector<1x128xf32>
    %116 = vector.broadcast %115 : vector<1x128xf32> to vector<8x128xf32>
    %117 = arith.addf %114, %116 : vector<8x128xf32>
    %c0_93 = arith.constant 0 : index
    %c0_94 = arith.constant 0 : index
    %c0_95 = arith.constant 0 : index
    %118 = vector.load %arg11[%c0_93, %c0_94, %c0_95] : memref<1x8x128xf32, #tpu.memory_space<vmem>>, vector<1x8x128xf32>
    %119 = vector.shape_cast %118 : vector<1x8x128xf32> to vector<8x128xf32>
    %120 = vector.shape_cast %117 : vector<8x128xf32> to vector<1x8x128xf32>
    tpu.vector_store %arg11[%c0_93, %c0_94, %c0_95], %120 {strides = array<i32>} : memref<1x8x128xf32, #tpu.memory_space<vmem>>, vector<1x8x128xf32>,
    return
  }
  func.func @transform_0(%arg0: i32) -> (i32, i32, i32) {
    %c0_i32 = arith.constant 0 : i32
    %c0_i32_0 = arith.constant 0 : i32
    %c0_i32_1 = arith.constant 0 : i32
    return %arg0, %c0_i32, %c0_i32_0 : i32, i32, i32
  }
  func.func @transform_1(%arg0: i32) -> (i32, i32) {
    %c0_i32 = arith.constant 0 : i32
    %c0_i32_0 = arith.constant 0 : i32
    %c0_i32_1 = arith.constant 0 : i32
    return %c0_i32, %c0_i32_0 : i32, i32
  }
  func.func @transform_2(%arg0: i32) -> (i32, i32) {
    %c0_i32 = arith.constant 0 : i32
    %c0_i32_0 = arith.constant 0 : i32
    %c0_i32_1 = arith.constant 0 : i32
    return %c0_i32, %c0_i32_0 : i32, i32
  }
  func.func @transform_3(%arg0: i32) -> (i32, i32, i32) {
    %c0_i32 = arith.constant 0 : i32
    %c0_i32_0 = arith.constant 0 : i32
    %c0_i32_1 = arith.constant 0 : i32
    %c0_i32_2 = arith.constant 0 : i32
    return %c0_i32, %c0_i32_0, %c0_i32_1 : i32, i32, i32
  }
  func.func @transform_4(%arg0: i32) -> (i32, i32) {
    %c0_i32 = arith.constant 0 : i32
    %c0_i32_0 = arith.constant 0 : i32
    %c0_i32_1 = arith.constant 0 : i32
    return %c0_i32, %c0_i32_0 : i32, i32
  }
  func.func @transform_5(%arg0: i32) -> (i32, i32) {
    %c0_i32 = arith.constant 0 : i32
    %c0_i32_0 = arith.constant 0 : i32
    %c0_i32_1 = arith.constant 0 : i32
    return %c0_i32, %c0_i32_0 : i32, i32
  }
  func.func @transform_6(%arg0: i32) -> (i32, i32) {
    %c0_i32 = arith.constant 0 : i32
    %c0_i32_0 = arith.constant 0 : i32
    %c0_i32_1 = arith.constant 0 : i32
    return %c0_i32, %c0_i32_0 : i32, i32
  }
  func.func @transform_7(%arg0: i32) -> (i32, i32) {
    %c0_i32 = arith.constant 0 : i32
    %c0_i32_0 = arith.constant 0 : i32
    %c0_i32_1 = arith.constant 0 : i32
    return %c0_i32, %c0_i32_0 : i32, i32
  }
  func.func @transform_8(%arg0: i32) -> (i32, i32) {
    %c0_i32 = arith.constant 0 : i32
    %c0_i32_0 = arith.constant 0 : i32
    %c0_i32_1 = arith.constant 0 : i32
    return %c0_i32, %c0_i32_0 : i32, i32
  }
  func.func @transform_9(%arg0: i32) -> (i32, i32) {
    %c0_i32 = arith.constant 0 : i32
    %c0_i32_0 = arith.constant 0 : i32
    %c0_i32_1 = arith.constant 0 : i32
    return %c0_i32, %c0_i32_0 : i32, i32
  }
  func.func @transform_10(%arg0: i32) -> (i32, i32, i32) {
    %c0_i32 = arith.constant 0 : i32
    %c0_i32_0 = arith.constant 0 : i32
    %c0_i32_1 = arith.constant 0 : i32
    return %arg0, %c0_i32, %c0_i32_0 : i32, i32, i32
  }
}

</mosaic_0001>

<bundles_post_ra>
// kernel: base_encoder_forward.1
= control target key start
LH: loop header
LB: loop body
LE: loop exit
PB: predicated region body
PF: predicated region fallthrough
CT: control target
= control target key end

     0   :  { %s3616_s13 = smov 0   ;;  %s4046_s0 = inlined_call_operand.vmem [shape: bf16[2,256,16], index: 0, kind: input, shape index: {}]   ;;  %s4047_s1 = inlined_call_operand.vmem [shape: bf16[16,128], index: 1, kind: input, shape index: {}]   ;;  %s4048_s2 = inlined_call_operand.vmem [shape: f32[1,128], index: 2, kind: input, shape index: {}]   ;;  %s4049_s3 = inlined_call_operand.vmem [shape: bf16[9,128,128], index: 3, kind: input, shape index: {}]   ;;  %s4050_s4 = inlined_call_operand.vmem [shape: f32[1,128], index: 4, kind: input, shape index: {}]   ;;  %s4051_s5 = inlined_call_operand.vmem [shape: bf16[384,128], index: 5, kind: input, shape index: {}]   ;;  %s4052_s6 = inlined_call_operand.vmem [shape: f32[1,128], index: 6, kind: input, shape index: {}]   ;;  %s4053_s7 = inlined_call_operand.vmem [shape: f32[8,128], index: 7, kind: input, shape index: {}]   ;;  %s4054_s8 = inlined_call_operand.vmem [shape: f32[1,128], index: 8, kind: input, shape index: {}]   ;;  %s4055_s9 = inlined_call_operand.vmem [shape: f32[1,128], index: 9, kind: input, shape index: {}]   ;;  %s4056_s10 = inlined_call_operand.vmem [shape: f32[2,8,128], index: 10, kind: output, shape index: {}]  }
   0x1 LB: > { %s2579_s14 = sadd.s32 4294967295, %s3557_s13   ;;  %p2583_p0 = scmp.ge.s32.totalorder %s3557_s13, 1  ;;  %s3557_s13 = sphi %s3616_s13, %s20_s13  }
   0x2   : > { %p312_p1 = scmp.lt.s32.totalorder %s3557_s13, 3 }
   0x4   : > { %p313_p2 = pnand %p2583_p0, %p312_p1 }
   0x5   : > { %p349_p3 = scmp.lt.s32.totalorder (!%p313_p2), %s2579_s14, 1 }
   0x6   : > { %316 = sbr.rel (%p313_p2) target bundleno = 1121 (0x461), region = 60 }
   0xb   : > { %v3421_v0 = vld [vmem:[%s4047_s1] sm:$0xff]   ;;  %s4060_s14 = smov (!%p349_p3, %s2579_s14), 1  ;;  %vm486_vm0 = vcmask 130048   ;;  %v3438_v17 = vld [vmem:[%s4049_s3 + $0xb8] sm:$0xff]   ;;  %v3439_v18 = vld [vmem:[%s4049_s3 + $0xb0] sm:$0xff]   ;;  %vm3560_vm4 = vmmov 0  }
   0xc   : > { %3177 = vmatprep.subr.bf16.mxu0 %v3421_v0  ;;  %s2905_s17 = sshll.u32 %s4060_s14, 7  ;;  %v3440_v19 = vld [vmem:[%s4049_s3 + $0xa8] sm:$0xff]   ;;  %v3441_v20 = vld [vmem:[%s4049_s3 + $0xa0] sm:$0xff]   ;;  %v3442_v21 = vld [vmem:[%s4049_s3 + $0x98] sm:$0xff]   ;;  %vm1666_vm1 = vsmask.f32 3328 }
   0xd   : > { %3178 = vmatpush3.bf16.msra.mxu0 %v3421_v0  ;;  %s3633_s20 = scalar_lea.vmem %s4046_s0, %s2905_s17  ;;  %v3443_v22 = vld [vmem:[%s4049_s3 + $0x90] sm:$0xff]   ;;  %v3444_v23 = vld [vmem:[%s4049_s3 + $0x88] sm:$0xff]   ;;  %v3445_v24 = vld [vmem:[%s4049_s3 + $0x80] sm:$0xff]   ;;  %vm1667_vm2 = vsmask.f32 7440  ;;  %s2586_s25 = sshll.u32 %s4060_s14, 3 }
   0xe   : > { %v3422_v1 = vld [vmem:[%s3633_s20] sm:$0xff]   ;;  %v3423_v2 = vld [vmem:[%s3633_s20 + $0x8] sm:$0xff]   ;;  %v3424_v3 = vld [vmem:[%s3633_s20 + $0x10] sm:$0xff]   ;;  %3251 = vmatprep.subr.bf16.mxu0 %v3438_v17  ;;  %s357_s30 = scalar_lea.vmem %s4056_s10, %s2586_s25 }
   0xf   : > { %3179 = vmatprep.mubr.msk.bf16.mxu0 %vm486_vm0, %v3422_v1  ;;  %v3425_v4 = vld [vmem:[%s3633_s20 + $0x18] sm:$0xff]   ;;  %v3426_v5 = vld [vmem:[%s3633_s20 + $0x20] sm:$0xff]   ;;  %v3427_v6 = vld [vmem:[%s3633_s20 + $0x28] sm:$0xff]  }
  0x10   : > { %3180 = vmatmul.mubr.msk.bf16.vlgmr.msra.gmra.mxu0 %vm486_vm0, %v3423_v2  ;;  %v3428_v7 = vld [vmem:[%s3633_s20 + $0x30] sm:$0xff]   ;;  %v3429_v8 = vld [vmem:[%s3633_s20 + $0x38] sm:$0xff]   ;;  %v3430_v9 = vld [vmem:[%s3633_s20 + $0x40] sm:$0xff]  }
  0x11   : > { %3183 = vmatprep.mubr.msk.bf16.mxu0 %vm486_vm0, %v3424_v3  ;;  %v3431_v10 = vld [vmem:[%s3633_s20 + $0x48] sm:$0xff]   ;;  %v3432_v11 = vld [vmem:[%s3633_s20 + $0x50] sm:$0xff]   ;;  %v3433_v12 = vld [vmem:[%s3633_s20 + $0x58] sm:$0xff]   ;;  %3252 = vmatpush3.bf16.msra.mxu0 %v3438_v17 }
  0x12   : > { %v3434_v13 = vld [vmem:[%s3633_s20 + $0x60] sm:$0xff]   ;;  %v3435_v14 = vld [vmem:[%s3633_s20 + $0x68] sm:$0xff]   ;;  %v3436_v15 = vld [vmem:[%s3633_s20 + $0x70] sm:$0xff]   ;;  %3253 = vmatprep.subr.bf16.mxu0 %v3439_v18 }
  0x13   : > { %v3437_v16 = vld [vmem:[%s3633_s20 + $0x78] sm:$0xff]   ;;  %v3449_v26 = vld [vmem:[%s4049_s3 + $0x70] sm:$0xff]   ;;  %v3450_v27 = vld [vmem:[%s4049_s3 + $0x68] sm:$0xff]  }
  0x14   : > { %v3446_v25 = vld [vmem:[%s4049_s3 + $0x78] sm:$0xff]   ;;  %v3451_v28 = vld [vmem:[%s4049_s3 + $0x60] sm:$0xff]   ;;  %v3454_v31 = vld [vmem:[%s4049_s3 + $0x50] sm:$0xff]  }
  0x15   : > { %3254 = vmatpush3.bf16.msra.mxu0 %v3439_v18  ;;  %3211 = vmatprep.subr.bf16.mxu1 %v3446_v25  ;;  %v3452_v29 = vld [vmem:[%s4049_s3 + $0x58] sm:$0xff]   ;;  %v3456_v32 = vld [vmem:[%s4049_s3 + $0x48] sm:$0xff]   ;;  %v3459_v33 = vld [vmem:[%s4049_s3 + $0x40] sm:$0xff]  }
  0x16   : > { %3255 = vmatprep.subr.bf16.mxu0 %v3440_v19  ;;  %3212 = vmatpush3.bf16.msra.mxu1 %v3446_v25  ;;  %v3709_v30 = vld [vmem:[%s4049_s3 + $0x138] sm:$0xff]   ;;  %v3730_v36 = vld [vmem:[%s4048_s2] ss:$0 sm:$0xff]  ;;  %vm3798_vm3 = vmor %vm1666_vm1, %vm1667_vm2 }
  0x17   : > { %3213 = vmatprep.subr.bf16.mxu1 %v3449_v26  ;;  %v3724_v34 = vld [vmem:[%s4049_s3 + $0x38] sm:$0xff]  }
  0x18   : > { %3184 = vmatmul.mubr.msk.bf16.gmra.mxu0 %vm486_vm0, %v3425_v4 }
  0x19   : > { %3187 = vmatprep.mubr.msk.bf16.mxu0 %vm486_vm0, %v3426_v5  ;;  %3256 = vmatpush3.bf16.msra.mxu0 %v3440_v19 }
  0x1a   : > { %3257 = vmatprep.subr.bf16.mxu0 %v3441_v20  ;;  %3214 = vmatpush3.bf16.msra.mxu1 %v3449_v26 }
  0x1b   : > { %3215 = vmatprep.subr.bf16.mxu1 %v3450_v27 }
  0x1d   : > { %3258 = vmatpush3.bf16.msra.mxu0 %v3441_v20 }
  0x1e   : > { %3259 = vmatprep.subr.bf16.mxu0 %v3442_v21  ;;  %3216 = vmatpush3.bf16.msra.mxu1 %v3450_v27 }
  0x1f   : > { %3217 = vmatprep.subr.bf16.mxu1 %v3451_v28 }
  0x20   : > { %3188 = vmatmul.mubr.msk.bf16.gmra.mxu0 %vm486_vm0, %v3427_v6 }
  0x21   : > { %3191 = vmatprep.mubr.msk.bf16.mxu0 %vm486_vm0, %v3428_v7  ;;  %3260 = vmatpush3.bf16.msra.mxu0 %v3442_v21 }
  0x22   : > { %3261 = vmatprep.subr.bf16.mxu0 %v3443_v22  ;;  %3218 = vmatpush3.bf16.msra.mxu1 %v3451_v28 }
  0x23   : > { %3219 = vmatprep.subr.bf16.mxu1 %v3452_v29 }
  0x25   : > { %3262 = vmatpush3.bf16.msra.mxu0 %v3443_v22  ;;  %v3455_v22 = vld [vmem:[%s4049_s3 + $0x130] sm:$0xff]  }
  0x26   : > { %3263 = vmatprep.subr.bf16.mxu0 %v3444_v23  ;;  %3220 = vmatpush3.bf16.msra.mxu1 %v3452_v29 }
  0x27   : > { %3221 = vmatprep.subr.bf16.mxu1 %v3454_v31 }
  0x28   : > { %3192 = vmatmul.mubr.msk.bf16.gmra.mxu0 %vm486_vm0, %v3429_v8 }
  0x29   : > { %3195 = vmatprep.mubr.msk.bf16.mxu0 %vm486_vm0, %v3430_v9  ;;  %3264 = vmatpush3.bf16.msra.mxu0 %v3444_v23 }
  0x2a   : > { %3265 = vmatprep.subr.bf16.mxu0 %v3445_v24  ;;  %3222 = vmatpush3.bf16.msra.mxu1 %v3454_v31 }
  0x2b   : > { %3223 = vmatprep.subr.bf16.mxu1 %v3456_v32 }
  0x2d   : > { %3266 = vmatpush3.bf16.msra.mxu0 %v3445_v24 }
  0x2e   : > { %3291 = vmatprep.subr.bf16.mxu0 %v3709_v30  ;;  %3224 = vmatpush3.bf16.msra.mxu1 %v3456_v32  ;;  %v3457_v32 = vld [vmem:[%s4049_s3 + $0x128] sm:$0xff]  }
  0x2f   : > { %3225 = vmatprep.subr.bf16.mxu1 %v3459_v33 }
  0x30   : > { %3196 = vmatmul.mubr.msk.bf16.gmra.mxu0 %vm486_vm0, %v3431_v10 }
  0x31   : > { %3199 = vmatprep.mubr.msk.bf16.mxu0 %vm486_vm0, %v3432_v11 }
  0x32   : > { %3226 = vmatpush3.bf16.msra.mxu1 %v3459_v33 }
  0x33   : > { %3231 = vmatprep.subr.bf16.mxu1 %v3724_v34 }
  0x38   : > { %3200 = vmatmul.mubr.msk.bf16.gmra.mxu0 %vm486_vm0, %v3433_v12 }
  0x39   : > { %3203 = vmatprep.mubr.msk.bf16.mxu0 %vm486_vm0, %v3434_v13 }
  0x40   : > { %3204 = vmatmul.mubr.msk.bf16.gmra.mxu0 %vm486_vm0, %v3435_v14 }
  0x41   : > { %3207 = vmatprep.mubr.msk.bf16.mxu0 %vm486_vm0, %v3436_v15 }
  0x48   : > { %3208 = vmatmul.mubr.msk.bf16.gmra.mxu0 %vm486_vm0, %v3437_v16 }
  0xd0   : > { %v3181_v35 = vpop.f32.mrf.mxu0 }
  0xd1   : > { %v578_v38 = vadd.f32 %v3181_v35, %v3730_v36 }
  0xd2   : > { %v569_v37 = vpop.f32.mrf.mxu0 }
  0xd3   : > { %v570_v40 = vadd.f32 %v3730_v36, %v569_v37  ;;  %v698_v43 = vmax.f32 %v578_v38, 0.0 }
  0xd4   : > { %v3182_v39 = vpop.f32.mrf.mxu0 }
  0xd5   : > { %v581_v41 = vadd.f32 %v3182_v39, %v3730_v36  ;;  %v696_v47 = vmax.f32 %v570_v40, 0.0  ;;  %v3460_v40 = vld [vmem:[%s4049_s3 + $0x120] sm:$0xff]  }
  0xd6   : > { %v572_v42 = vpop.f32.mrf.mxu0 }
  0xd7   : > { %v699_v44 = vmax.f32 %v581_v41, 0.0  ;;  %v573_v45 = vadd.f32 %v3730_v36, %v572_v42 }
  0xd8   : > { %v3185_v46 = vpop.f32.mrf.mxu0 }
  0xd9   : > { %v2947_v48 = vpack.c.bf16 %v699_v44, %v698_v43  ;;  %v697_v49 = vmax.f32 %v573_v45, 0.0  ;;  %v594_v52 = vadd.f32 %v3185_v46, %v3730_v36 }
  0xda   : > { %v585_v50 = vpop.f32.mrf.mxu0 }
  0xdb   : > { %3024 = vst [vmem:[#allocation2 + $0x8] sm:$0xff] %v2947_v48   ;;  %v2942_v51 = vpack.c.bf16 %v697_v49, %v696_v47  ;;  %v586_v54 = vadd.f32 %v3730_v36, %v585_v50  ;;  %v702_v57 = vmax.f32 %v594_v52, 0.0  ;;  %v3462_v49 = vld [vmem:[%s4049_s3 + $0x118] sm:$0xff]  }
  0xdc   : > { %v3186_v53 = vpop.f32.mrf.mxu0 }
  0xdd   : > { %2943 = vst [vmem:[#allocation2] sm:$0xff] %v2942_v51   ;;  %v597_v55 = vadd.f32 %v3186_v53, %v3730_v36  ;;  %v700_v61 = vmax.f32 %v586_v54, 0.0  ;;  %v3466_v54 = vld [vmem:[%s4049_s3 + $0x110] sm:$0xff]  }
  0xde   : > { %v588_v56 = vpop.f32.mrf.mxu0 }
  0xdf   : > { %v703_v58 = vmax.f32 %v597_v55, 0.0  ;;  %v589_v59 = vadd.f32 %v3730_v36, %v588_v56 }
  0xe0   : > { %v3189_v60 = vpop.f32.mrf.mxu0 }
  0xe1   : > { %v2957_v62 = vpack.c.bf16 %v703_v58, %v702_v57  ;;  %v701_v63 = vmax.f32 %v589_v59, 0.0  ;;  %v610_v2 = vadd.f32 %v3189_v60, %v3730_v36 }
  0xe2   : > { %v601_v0 = vpop.f32.mrf.mxu0 }
  0xe3   : > { %3026 = vst [vmem:[#allocation2 + $0x18] sm:$0xff] %v2957_v62   ;;  %v2952_v1 = vpack.c.bf16 %v701_v63, %v700_v61  ;;  %v602_v4 = vadd.f32 %v3730_v36, %v601_v0  ;;  %v706_v7 = vmax.f32 %v610_v2, 0.0  ;;  %v3468_v61 = vld [vmem:[%s4049_s3 + $0x108] sm:$0xff]  }
  0xe4   : > { %v3190_v3 = vpop.f32.mrf.mxu0 }
  0xe5   : > { %3025 = vst [vmem:[#allocation2 + $0x10] sm:$0xff] %v2952_v1   ;;  %v613_v5 = vadd.f32 %v3190_v3, %v3730_v36  ;;  %v704_v11 = vmax.f32 %v602_v4, 0.0 }
  0xe6   : > { %v604_v6 = vpop.f32.mrf.mxu0 }
  0xe7   : > { %v707_v8 = vmax.f32 %v613_v5, 0.0  ;;  %v605_v9 = vadd.f32 %v3730_v36, %v604_v6  ;;  %v3470_v5 = vld [vmem:[%s4049_s3 + $0x100] sm:$0xff]  }
  0xe8   : > { %v3193_v10 = vpop.f32.mrf.mxu0 }
  0xe9   : > { %v2967_v12 = vpack.c.bf16 %v707_v8, %v706_v7  ;;  %v705_v13 = vmax.f32 %v605_v9, 0.0  ;;  %v626_v16 = vadd.f32 %v3193_v10, %v3730_v36  ;;  %v1660_v10 = vld [vmem:[#allocation2] sm:$0xf] }
  0xea   : > { %v617_v14 = vpop.f32.mrf.mxu0  ;;  %v3448_v21 = vld [vmem:[#allocation2 + $0x18] ss:$0 sps:$4 sm:$0xff]  }
  0xeb   : > { %3028 = vst [vmem:[#allocation2 + $0x28] sm:$0xff] %v2967_v12   ;;  %v2962_v15 = vpack.c.bf16 %v705_v13, %v704_v11  ;;  %v618_v19 = vadd.f32 %v3730_v36, %v617_v14  ;;  %v710_v24 = vmax.f32 %v626_v16, 0.0  ;;  %v3473_v14 = vld [vmem:[%s4049_s3 + $0x1b8] sm:$0xff]   ;;  %v1662_v16 = vld [vmem:[#allocation2 + $0x8] sm:$0xf] }
  0xec   : > { %v3194_v17 = vpop.f32.mrf.mxu0  ;;  %v3447_v18 = vld [vmem:[#allocation2 + $0x8] ss:$8 sps:$4 sm:$0xff]  }
  0xed   : > { %3027 = vst [vmem:[#allocation2 + $0x20] sm:$0xff] %v2962_v15   ;;  %v629_v20 = vadd.f32 %v3194_v17, %v3730_v36  ;;  %3267 = vmatprep.mubr.bf16.mxu0 %v3447_v18  ;;  %v708_v28 = vmax.f32 %v618_v19, 0.0  ;;  %v1670_v17 = vshrl.u32 %v1660_v10, 16 }
  0xee   : > { %v620_v23 = vpop.f32.mrf.mxu0  ;;  %3268 = vmatmul.mubr.bf16.vlgmr.msra.gmra.mxu0 %v3448_v21 }
  0xef   : > { %v711_v25 = vmax.f32 %v629_v20, 0.0  ;;  %v621_v26 = vadd.f32 %v3730_v36, %v620_v23  ;;  %3292 = vmatpush3.bf16.msra.mxu0 %v3709_v30  ;;  %v1673_v20 = vshll.u32 %v1660_v10, 16  ;;  %v3465_v23 = vld [vmem:[%s4049_s3 + $0x30] sm:$0xff]  }
  0xf0   : > { %v3197_v27 = vpop.f32.mrf.mxu0  ;;  %3293 = vmatprep.subr.bf16.mxu0 %v3455_v22 }
  0xf1   : > { %v2977_v29 = vpack.c.bf16 %v711_v25, %v710_v24  ;;  %v709_v31 = vmax.f32 %v621_v26, 0.0  ;;  %v642_v37 = vadd.f32 %v3197_v27, %v3730_v36  ;;  %v3464_v24 = vld [vmem:[#allocation2] ss:$8 sps:$4 sm:$0xff]   ;;  %v1684_v25 = vshrl.u32 %v1662_v16, 16 }
  0xf2   : > { %v633_v33 = vpop.f32.mrf.mxu0  ;;  %v1687_v26 = vshll.u32 %v1662_v16, 16  ;;  %v3487_v16 = vld [vmem:[%s4049_s3 + $0xe8] sm:$0xff]  }
  0xf3   : > { %3030 = vst [vmem:[#allocation2 + $0x38] sm:$0xff] %v2977_v29   ;;  %v2972_v35 = vpack.c.bf16 %v709_v31, %v708_v28  ;;  %3294 = vmatpush3.bf16.msra.mxu0 %v3455_v22  ;;  %v634_v39 = vadd.f32 %v3730_v36, %v633_v33  ;;  %v714_v42 = vmax.f32 %v642_v37, 0.0  ;;  %v1672_v28 = vrot.slane %v1670_v17, 4  ;;  %v3467_v33 = vld [vmem:[%s4049_s3 + $0x28] sm:$0xff]  }
  0xf4   : > { %v3198_v38 = vpop.f32.mrf.mxu0  ;;  %3295 = vmatprep.subr.bf16.mxu0 %v3457_v32  ;;  %v1686_v37 = vrot.slane %v1684_v25, 4  ;;  %v3488_v17 = vld [vmem:[%s4049_s3 + $0x188] sm:$0xff]  }
  0xf5   : > { %3029 = vst [vmem:[#allocation2 + $0x30] sm:$0xff] %v2972_v35   ;;  %v645_v30 = vadd.f32 %v3198_v38, %v3730_v36  ;;  %v712_v46 = vmax.f32 %v634_v39, 0.0  ;;  %v1689_v38 = vrot.slane %v1687_v26, 5  ;;  %v1661_v39 = vld [vmem:[#allocation2 + $0x4] sm:$0x1] }
  0xf6   : > { %v636_v41 = vpop.f32.mrf.mxu0  ;;  %v2006_v26 = vld [vmem:[#allocation2 + $0xc] sm:$0x1] }
  0xf7   : > { %v715_v43 = vmax.f32 %v645_v30, 0.0  ;;  %v637_v44 = vadd.f32 %v3730_v36, %v636_v41  ;;  %3296 = vmatpush3.bf16.msra.mxu0 %v3457_v32  ;;  %v1675_v32 = vrot.slane %v1673_v20, 5  ;;  %v1663_v41 = vld [vmem:[#allocation2 + $0xc] sm:$0x1] }
  0xf8   : > { %v3201_v45 = vpop.f32.mrf.mxu0  ;;  %3297 = vmatprep.subr.bf16.mxu0 %v3460_v40 }
  0xf9   : > { %v2987_v47 = vpack.c.bf16 %v715_v43, %v714_v42  ;;  %v713_v48 = vmax.f32 %v637_v44, 0.0  ;;  %v1679_v42 = vshll.u32 %v1661_v39, 16  ;;  %v1690_v43 = vor.u32 %v1689_v38, %v1686_v37  ;;  %v3492_v38 = vld [vmem:[%s4049_s3 + $0x238] sm:$0xff]  }
  0xfa   : > { %v649_v50 = vpop.f32.mrf.mxu0  ;;  %v1693_v45 = vshll.u32 %v1663_v41, 16 }
  0xfb   : > { %3032 = vst [vmem:[#allocation2 + $0x48] sm:$0xff] %v2987_v47   ;;  %v2982_v51 = vpack.c.bf16 %v713_v48, %v712_v46  ;;  %3298 = vmatpush3.bf16.msra.mxu0 %v3460_v40  ;;  %v650_v53 = vadd.f32 %v3730_v36, %v649_v50  ;;  %v3469_v40 = vld [vmem:[%s4049_s3 + $0x20] sm:$0xff]   ;;  %v3471_v46 = vld [vmem:[%s4049_s3 + $0x18] sm:$0xff]   ;;  %v1681_v47 = vrot.slane %v1679_v42, 5  ;;  %v1691_v48 = vrot.slane %v1690_v43, 4  ;;  %v3493_v43 = vld [vmem:[%s4049_s3 + $0xd0] sm:$0xff]  }
  0xfc   : > { %v3202_v52 = vpop.f32.mrf.mxu0  ;;  %3299 = vmatprep.subr.bf16.mxu0 %v3462_v49 }
  0xfd   : > { %3031 = vst [vmem:[#allocation2 + $0x40] sm:$0xff] %v2982_v51   ;;  %v716_v58 = vmax.f32 %v650_v53, 0.0  ;;  %v1695_v51 = vrot.slane %v1693_v45, 5  ;;  %v3475_v53 = vld [vmem:[%s4049_s3 + $0x10] sm:$0xff]  }
  0xfe   : > { %v652_v55 = vpop.f32.mrf.mxu0 }
  0xff   : > { %v653_v56 = vadd.f32 %v3730_v36, %v652_v55  ;;  %3300 = vmatpush3.bf16.msra.mxu0 %v3462_v49  ;;  %v3476_v55 = vld [vmem:[%s4049_s3 + $0x1b0] sm:$0xff]   ;;  %v3525_v49 = vld [vmem:[%s4051_s5 + $0x38] sm:$0xff]  }
 0x100   : > { %v3205_v57 = vpop.f32.mrf.mxu0  ;;  %3301 = vmatprep.subr.bf16.mxu0 %v3466_v54 }
 0x101   : > { %v717_v59 = vmax.f32 %v653_v56, 0.0  ;;  %v674_v60 = vadd.f32 %v3205_v57, %v3730_v36  ;;  %v3477_v57 = vld [vmem:[%s4049_s3 + $0x8] sm:$0xff]  }
 0x102   : > { %v665_v62 = vpop.f32.mrf.mxu0 }
 0x103   : > { %v2992_v63 = vpack.c.bf16 %v717_v59, %v716_v58  ;;  %v666_v0 = vadd.f32 %v3730_v36, %v665_v62  ;;  %3302 = vmatpush3.bf16.msra.mxu0 %v3466_v54  ;;  %v722_v3 = vmax.f32 %v674_v60, 0.0  ;;  %v1696_v54 = vsel %vm3798_vm3, %v1691_v48, %v1695_v51  ;;  %v3478_v58 = vld [vmem:[%s4049_s3 + $0x1a8] sm:$0xff]   ;;  %v3479_v59 = vld [vmem:[%s4049_s3] sm:$0xff]   ;;  %v3482_v62 = vld [vmem:[%s4049_s3 + $0xf8] sm:$0xff]  }
 0x104   : > { %v3206_v1 = vpop.f32.mrf.mxu0  ;;  %v3458_v2 = vld [vmem:[#allocation2 + $0x40] ss:$8 sps:$4 sm:$0xff]   ;;  %3303 = vmatprep.subr.bf16.mxu0 %v3468_v61  ;;  %v2009_v51 = vld [vmem:[#allocation2 + $0x18] sm:$0xf] }
 0x105   : > { %3033 = vst [vmem:[#allocation2 + $0x50] sm:$0xff] %v2992_v63   ;;  %v677_v4 = vadd.f32 %v3206_v1, %v3730_v36  ;;  %3227 = vmatprep.mubr.bf16.mxu1 %v3458_v2  ;;  %v720_v7 = vmax.f32 %v666_v0, 0.0  ;;  %v3480_v60 = vld [vmem:[%s4049_s3 + $0x1a0] sm:$0xff]   ;;  %v3483_v63 = vld [vmem:[%s4049_s3 + $0x198] sm:$0xff]   ;;  %v2007_v0 = vld [vmem:[#allocation2 + $0x10] sm:$0xf] }
 0x106   : > { %v668_v6 = vpop.f32.mrf.mxu0  ;;  %v3497_v48 = vld [vmem:[%s4049_s3 + $0xc0] sm:$0xff]  }
 0x107   : > { %v723_v8 = vmax.f32 %v677_v4, 0.0  ;;  %v669_v9 = vadd.f32 %v3730_v36, %v668_v6  ;;  %3304 = vmatpush3.bf16.msra.mxu0 %v3468_v61  ;;  %v1664_v61 = vld [vmem:[#allocation2 + $0x10] sm:$0xf]  ;;  %v2026_v4 = vshrl.u32 %v2007_v0, 16 }
 0x108   : > { %v3209_v11 = vpop.f32.mrf.mxu0  ;;  %3305 = vmatprep.subr.bf16.mxu0 %v3470_v5  ;;  %v1698_v1 = vshrl.u32 %v1664_v61, 16  ;;  %v1701_v2 = vshll.u32 %v1664_v61, 16  ;;  %v3481_v6 = vld [vmem:[#allocation2 + $0x10] ss:$0 sps:$4 sm:$0xff]  }
 0x109   : > { %v3007_v12 = vpack.c.bf16 %v723_v8, %v722_v3  ;;  %v721_v13 = vmax.f32 %v669_v9, 0.0  ;;  %v2005_v3 = vld [vmem:[#allocation2 + $0x8] sm:$0xf]  ;;  %v3486_v9 = vld [vmem:[%s4049_s3 + $0x190] sm:$0xff]  }
 0x10a   : > { %v681_v15 = vpop.f32.mrf.mxu0  ;;  %v3484_v8 = vld [vmem:[#allocation2 + $0x20] ss:$8 sps:$4 sm:$0xff]   ;;  %v2012_v10 = vshrl.u32 %v2005_v3, 16  ;;  %v2015_v11 = vshll.u32 %v2005_v3, 16 }
 0x10b   : > { %3036 = vst [vmem:[#allocation2 + $0x68] sm:$0xff] %v3007_v12   ;;  %v3002_v18 = vpack.c.bf16 %v721_v13, %v720_v7  ;;  %v682_v19 = vadd.f32 %v3730_v36, %v681_v15  ;;  %3306 = vmatpush3.bf16.msra.mxu0 %v3470_v5  ;;  %v2029_v5 = vshll.u32 %v2007_v0, 16  ;;  %v3485_v7 = vld [vmem:[%s4049_s3 + $0xf0] sm:$0xff]   ;;  %v1700_v12 = vrot.slane %v1698_v1, 4  ;;  %v2010_v0 = vld [vmem:[#allocation2 + $0x1c] sm:$0x1] }
 0x10c   : > { %v3210_v21 = vpop.f32.mrf.mxu0  ;;  %v3463_v22 = vld [vmem:[#allocation2 + $0x50] ss:$0 sps:$4 sm:$0xff]   ;;  %3331 = vmatprep.subr.bf16.mxu0 %v3473_v14  ;;  %v1703_v13 = vrot.slane %v1701_v2, 5  ;;  %v2017_v20 = vrot.slane %v2015_v11, 5  ;;  %v3507_v2 = vld [vmem:[%s4049_s3 + $0x160] sm:$0xff]   ;;  %v2049_v3 = vshll.u32 %v2010_v0, 16 }
 0x10d   : > { %3035 = vst [vmem:[#allocation2 + $0x60] sm:$0xff] %v3002_v18   ;;  %3228 = vmatmul.mubr.bf16.vlgmr.msra.gmra.mxu1 %v3463_v22  ;;  %v724_v29 = vmax.f32 %v682_v19, 0.0  ;;  %v2031_v15 = vrot.slane %v2029_v5, 5  ;;  %v1665_v18 = vld [vmem:[#allocation2 + $0x14] sm:$0x1]  ;;  %v2014_v19 = vrot.slane %v2012_v10, 4 }
 0x10e   : > { %v684_v27 = vpop.f32.mrf.mxu0  ;;  %3232 = vmatpush3.bf16.msra.mxu1 %v3724_v34  ;;  %3247 = vmatprep.mubr.bf16.mxu1 %v3464_v24  ;;  %v1704_v21 = vor.u32 %v1703_v13, %v1700_v12  ;;  %v2008_v22 = vld [vmem:[#allocation2 + $0x14] sm:$0x1]  ;;  %v3489_v24 = vld [vmem:[%s4049_s3 + $0xe0] sm:$0xff]   ;;  %v1707_v25 = vshll.u32 %v1665_v18, 16 }
 0x10f   : > { %v685_v31 = vadd.f32 %v3730_v36, %v684_v27  ;;  %3233 = vmatprep.subr.bf16.mxu1 %v3465_v23  ;;  %v1676_v36 = vor.u32 %v1675_v32, %v1672_v28  ;;  %v3490_v27 = vld [vmem:[%s4049_s3 + $0x180] sm:$0xff]   ;;  %v2018_v28 = vor.u32 %v2017_v20, %v2014_v19  ;;  %v2021_v32 = vshll.u32 %v2006_v26, 16  ;;  %v3510_v13 = vld [vmem:[%s4049_s3 + $0x150] sm:$0xff]   ;;  %v3511_v19 = vld [vmem:[%s4049_s3 + $0x148] sm:$0xff]  }
 0x110   : > { %v1709_v37 = vrot.slane %v1707_v25, 5  ;;  %v3512_v25 = vld [vmem:[%s4049_s3 + $0x140] sm:$0xff]   ;;  %v3523_v0 = vld [vmem:[%s4051_s5 + $0xb0] sm:$0xff]  }
 0x111   : > { %v725_v35 = vmax.f32 %v685_v31, 0.0  ;;  %v1677_v44 = vrot.slane %v1676_v36, 4  ;;  %v1705_v31 = vrot.slane %v1704_v21, 4  ;;  %v2019_v39 = vrot.slane %v2018_v28, 4 }
 0x112   : > { %3234 = vmatpush3.bf16.msra.mxu1 %v3465_v23  ;;  %v2023_v36 = vrot.slane %v2021_v32, 5 }
 0x113   : > { %v3012_v30 = vpack.c.bf16 %v725_v35, %v724_v29  ;;  %3235 = vmatprep.subr.bf16.mxu1 %v3467_v33  ;;  %v1682_v50 = vsel %vm3798_vm3, %v1677_v44, %v1681_v47  ;;  %v2035_v29 = vshll.u32 %v2008_v22, 16  ;;  %v3491_v35 = vld [vmem:[%s4049_s3 + $0xd8] sm:$0xff]   ;;  %v3494_v44 = vld [vmem:[%s4049_s3 + $0x230] sm:$0xff]   ;;  %v3496_v47 = vld [vmem:[%s4049_s3 + $0x228] sm:$0xff]  }
 0x114   : > { %v3472_v34 = vld [vmem:[#allocation2 + $0x60] ss:$8 sps:$4 sm:$0xff]   ;;  %v2809_v56 = vcombine.low %v1682_v50, %v1696_v54  ;;  %v2024_v42 = vsel %vm3798_vm3, %v2019_v39, %v2023_v36  ;;  %v2040_v54 = vshrl.u32 %v2009_v51, 16  ;;  %v1835_v22 = vld [vmem:[#allocation2 + $0x44] sm:$0x1] }
 0x115   : > { %3037 = vst [vmem:[#allocation2 + $0x70] sm:$0xff] %v3012_v30   ;;  %3307 = vmatprep.mubr.bf16.mxu0 %v3472_v34  ;;  %v2037_v30 = vrot.slane %v2035_v29, 5  ;;  %v3498_v50 = vld [vmem:[%s4049_s3 + $0x220] sm:$0xff]   ;;  %v1850_v26 = vshll.u32 %v1835_v22, 16  ;;  %v3516_v36 = vld [vmem:[%s4049_s3 + $0x1e8] sm:$0xff]  }
 0x116   : > { %3236 = vmatpush3.bf16.msra.mxu1 %v3467_v33 }
 0x117   : > { %3237 = vmatprep.subr.bf16.mxu1 %v3469_v40  ;;  %v1852_v32 = vrot.slane %v1850_v26, 5  ;;  %v3541_v26 = vld [vmem:[%s4051_s5 + $0x80] sm:$0xff]  }
 0x11a   : > { %3238 = vmatpush3.bf16.msra.mxu1 %v3469_v40  ;;  %v1710_v40 = vsel %vm3798_vm3, %v1705_v31, %v1709_v37  ;;  %v3514_v31 = vld [vmem:[%s4049_s3 + $0x1f8] sm:$0xff]  }
 0x11b   : > { %3239 = vmatprep.subr.bf16.mxu1 %v3471_v46  ;;  %v2810_v41 = vcombine.low %v1710_v40, %v1710_v40 }
 0x11c   : > { %v3474_v52 = vld [vmem:[#allocation2 + $0x70] ss:$0 sps:$4 sm:$0xff]  }
 0x11d   : > { %3308 = vmatmul.mubr.bf16.vlgmr.msra.gmra.mxu0 %v3474_v52  ;;  %v3500_v52 = vld [vmem:[%s4049_s3 + $0x178] sm:$0xff]  }
 0x11e   : > { %3240 = vmatpush3.bf16.msra.mxu1 %v3471_v46  ;;  %3332 = vmatpush3.bf16.msra.mxu0 %v3473_v14  ;;  %v2028_v14 = vrot.slane %v2026_v4, 4  ;;  %v3495_v46 = vld [vmem:[%s4049_s3 + $0xc8] sm:$0xff]   ;;  %v3508_v4 = vld [vmem:[%s4049_s3 + $0x200] sm:$0xff]  }
 0x11f   : > { %3347 = vmatprep.mubr.bf16.mxu0 %v2809_v56  ;;  %3241 = vmatprep.subr.bf16.mxu1 %v3475_v53  ;;  %v3499_v56 = vld [vmem:[#allocation2 + $0x30] ss:$0 sps:$4 sm:$0xff]  }
 0x120   : > { %3333 = vmatprep.subr.bf16.mxu0 %v3476_v55  ;;  %v2032_v23 = vor.u32 %v2031_v15, %v2028_v14 }
 0x122   : > { %3242 = vmatpush3.bf16.msra.mxu1 %v3475_v53  ;;  %3334 = vmatpush3.bf16.msra.mxu0 %v3476_v55  ;;  %v2033_v33 = vrot.slane %v2032_v23, 4  ;;  %v3501_v53 = vld [vmem:[%s4049_s3 + $0x218] sm:$0xff]   ;;  %v2043_v55 = vshll.u32 %v2009_v51, 16 }
 0x123   : > { %3243 = vmatprep.subr.bf16.mxu1 %v3477_v57  ;;  %3335 = vmatprep.subr.bf16.mxu0 %v3478_v58 }
 0x124   : > { %v2038_v34 = vsel %vm3798_vm3, %v2033_v33, %v2037_v30  ;;  %v2045_v61 = vrot.slane %v2043_v55, 5  ;;  %v3515_v30 = vld [vmem:[%s4049_s3 + $0x1f0] sm:$0xff]  }
 0x125   : > { %v2861_v45 = vcombine.low %v2024_v42, %v2038_v34  ;;  %v3517_v34 = vld [vmem:[%s4049_s3 + $0x1e0] sm:$0xff]   ;;  %v3518_v42 = vld [vmem:[%s4049_s3 + $0x1d8] sm:$0xff]  }
 0x126   : > { %3244 = vmatpush3.bf16.msra.mxu1 %v3477_v57  ;;  %3336 = vmatpush3.bf16.msra.mxu0 %v3478_v58  ;;  %v3503_v57 = vld [vmem:[%s4049_s3 + $0x170] sm:$0xff]  }
 0x127   : > { %3245 = vmatprep.subr.bf16.mxu1 %v3479_v59  ;;  %3337 = vmatprep.subr.bf16.mxu0 %v3480_v60  ;;  %v3502_v58 = vld [vmem:[#allocation2 + $0x28] ss:$8 sps:$4 sm:$0xff]  }
 0x12a   : > { %3246 = vmatpush3.bf16.msra.mxu1 %v3479_v59  ;;  %3338 = vmatpush3.bf16.msra.mxu0 %v3480_v60  ;;  %v3504_v59 = vld [vmem:[%s4049_s3 + $0x210] sm:$0xff]   ;;  %v2042_v60 = vrot.slane %v2040_v54, 4 }
 0x12b   : > { %3271 = vmatprep.subr.bf16.mxu1 %v3482_v62  ;;  %3339 = vmatprep.subr.bf16.mxu0 %v3483_v63 }
 0x12c   : > { %v2046_v1 = vor.u32 %v2045_v61, %v2042_v60  ;;  %v3522_v61 = vld [vmem:[%s4051_s5 + $0xb8] sm:$0xff]  }
 0x12d   : > { %3248 = vmatmul.mubr.bf16.vlgmr.msra.gmra.mxu1 %v3481_v6  ;;  %v1834_v6 = vld [vmem:[#allocation2 + $0x40] sm:$0xf] }
 0x12e   : > { %3272 = vmatpush3.bf16.msra.mxu1 %v3482_v62  ;;  %3287 = vmatprep.mubr.bf16.mxu1 %v3484_v8  ;;  %v3505_v62 = vld [vmem:[%s4049_s3 + $0x168] sm:$0xff]   ;;  %v2047_v5 = vrot.slane %v2046_v1, 4  ;;  %v2051_v8 = vrot.slane %v2049_v3, 5  ;;  %v1841_v11 = vshrl.u32 %v1834_v6, 16  ;;  %v1844_v12 = vshll.u32 %v1834_v6, 16  ;;  %v3527_v3 = vld [vmem:[%s4051_s5 + $0x70] sm:$0xff]  }
 0x12f   : > { %3340 = vmatpush3.bf16.msra.mxu0 %v3483_v63  ;;  %3273 = vmatprep.subr.bf16.mxu1 %v3485_v7  ;;  %v3506_v63 = vld [vmem:[%s4049_s3 + $0x208] sm:$0xff]  }
 0x130   : > { %3341 = vmatprep.subr.bf16.mxu0 %v3486_v9  ;;  %v2052_v10 = vsel %vm3798_vm3, %v2047_v5, %v2051_v8  ;;  %v1846_v18 = vrot.slane %v1844_v12, 5  ;;  %v3526_v1 = vld [vmem:[%s4051_s5 + $0xa8] sm:$0xff]   ;;  %v3528_v5 = vld [vmem:[%s4051_s5 + $0x30] sm:$0xff]   ;;  %v3536_v12 = vld [vmem:[%s4051_s5 + $0x58] sm:$0xff]  }
 0x131   : > { %v3531_v8 = vld [vmem:[%s4051_s5 + $0x28] sm:$0xff]  }
 0x132   : > { %3274 = vmatpush3.bf16.msra.mxu1 %v3485_v7  ;;  %v3509_v7 = vld [vmem:[%s4049_s3 + $0x158] sm:$0xff]  }
 0x133   : > { %3342 = vmatpush3.bf16.msra.mxu0 %v3486_v9  ;;  %3275 = vmatprep.subr.bf16.mxu1 %v3487_v16  ;;  %v1836_v9 = vld [vmem:[#allocation2 + $0x48] sm:$0xf] }
 0x134   : > { %3343 = vmatprep.subr.bf16.mxu0 %v3488_v17  ;;  %v1855_v14 = vshrl.u32 %v1836_v9, 16  ;;  %v1858_v15 = vshll.u32 %v1836_v9, 16  ;;  %v3533_v9 = vld [vmem:[%s4051_s5 + $0x60] sm:$0xff]  }
 0x136   : > { %3276 = vmatpush3.bf16.msra.mxu1 %v3487_v16  ;;  %v2862_v16 = vcombine.low %v2052_v10, %v2052_v10  ;;  %v1857_v20 = vrot.slane %v1855_v14, 4  ;;  %v1860_v21 = vrot.slane %v1858_v15, 5  ;;  %v3529_v10 = vld [vmem:[%s4051_s5 + $0xa0] sm:$0xff]   ;;  %v3532_v14 = vld [vmem:[%s4051_s5 + $0x98] sm:$0xff]  }
 0x137   : > { %3344 = vmatpush3.bf16.msra.mxu0 %v3488_v17  ;;  %3277 = vmatprep.subr.bf16.mxu1 %v3489_v24  ;;  %v1843_v17 = vrot.slane %v1841_v11, 4  ;;  %v3534_v11 = vld [vmem:[%s4051_s5 + $0x20] sm:$0xff]   ;;  %v3537_v15 = vld [vmem:[%s4051_s5 + $0x18] sm:$0xff]  }
 0x138   : > { %3345 = vmatprep.subr.bf16.mxu0 %v3490_v27 }
 0x139   : > { %v1847_v23 = vor.u32 %v1846_v18, %v1843_v17  ;;  %v3535_v17 = vld [vmem:[%s4051_s5 + $0x90] sm:$0xff]  }
 0x13a   : > { %3278 = vmatpush3.bf16.msra.mxu1 %v3489_v24  ;;  %v1837_v24 = vld [vmem:[#allocation2 + $0x4c] sm:$0x1]  ;;  %v3539_v18 = vld [vmem:[%s4051_s5 + $0x50] sm:$0xff]  }
 0x13b   : > { %3346 = vmatpush3.bf16.msra.mxu0 %v3490_v27  ;;  %3279 = vmatprep.subr.bf16.mxu1 %v3491_v35  ;;  %v1861_v27 = vor.u32 %v1860_v21, %v1857_v20  ;;  %v1848_v28 = vrot.slane %v1847_v23, 4  ;;  %v1864_v29 = vshll.u32 %v1837_v24, 16  ;;  %v3540_v20 = vld [vmem:[%s4051_s5 + $0x10] sm:$0xff]   ;;  %v3542_v21 = vld [vmem:[%s4051_s5 + $0x48] sm:$0xff]  }
 0x13c   : > { %3371 = vmatprep.subr.bf16.mxu0 %v3492_v38  ;;  %v3538_v23 = vld [vmem:[%s4051_s5 + $0x88] sm:$0xff]  }
 0x13d   : > { %v1862_v33 = vrot.slane %v1861_v27, 4  ;;  %v1866_v37 = vrot.slane %v1864_v29, 5  ;;  %v3543_v24 = vld [vmem:[%s4051_s5 + $0x8] sm:$0xff]   ;;  %v3546_v27 = vld [vmem:[%s4051_s5] sm:$0xff]  }
 0x13e   : > { %3348 = vmatmul.mubr.bf16.vlgmr.msra.gmra.mxu0 %v2810_v41  ;;  %3280 = vmatpush3.bf16.msra.mxu1 %v3491_v35  ;;  %v1853_v35 = vsel %vm3798_vm3, %v1848_v28, %v1852_v32  ;;  %v1838_v41 = vld [vmem:[#allocation2 + $0x50] sm:$0xf] }
 0x13f   : > { %3372 = vmatpush3.bf16.msra.mxu0 %v3492_v38  ;;  %3387 = vmatprep.mubr.bf16.mxu0 %v2861_v45  ;;  %v3513_v38 = vld [vmem:[#allocation2 + $0x38] ss:$0 sps:$4 sm:$0xff]   ;;  %v1867_v39 = vsel %vm3798_vm3, %v1862_v33, %v1866_v37  ;;  %v3519_v45 = vld [vmem:[%s4049_s3 + $0x1d0] sm:$0xff]  }
 0x140   : > { %3281 = vmatprep.subr.bf16.mxu1 %v3493_v43  ;;  %3373 = vmatprep.subr.bf16.mxu0 %v3494_v44  ;;  %v2835_v40 = vcombine.low %v1853_v35, %v1867_v39 }
 0x142   : > { %3282 = vmatpush3.bf16.msra.mxu1 %v3493_v43  ;;  %v1869_v43 = vshrl.u32 %v1838_v41, 16 }
 0x143   : > { %3374 = vmatpush3.bf16.msra.mxu0 %v3494_v44  ;;  %3283 = vmatprep.subr.bf16.mxu1 %v3495_v46  ;;  %v1872_v44 = vshll.u32 %v1838_v41, 16 }
 0x144   : > { %3375 = vmatprep.subr.bf16.mxu0 %v3496_v47 }
 0x146   : > { %3284 = vmatpush3.bf16.msra.mxu1 %v3495_v46  ;;  %v1871_v46 = vrot.slane %v1869_v43, 4 }
 0x147   : > { %3376 = vmatpush3.bf16.msra.mxu0 %v3496_v47  ;;  %3285 = vmatprep.subr.bf16.mxu1 %v3497_v48  ;;  %v1874_v47 = vrot.slane %v1872_v44, 5 }
 0x148   : > { %3377 = vmatprep.subr.bf16.mxu0 %v3498_v50 }
 0x149   : > { %v1875_v51 = vor.u32 %v1874_v47, %v1871_v46 }
 0x14a   : > { %3286 = vmatpush3.bf16.msra.mxu1 %v3497_v48  ;;  %v3520_v48 = vld [vmem:[%s4049_s3 + $0x1c8] sm:$0xff]  }
 0x14b   : > { %3378 = vmatpush3.bf16.msra.mxu0 %v3498_v50  ;;  %3311 = vmatprep.subr.bf16.mxu1 %v3500_v52  ;;  %v1839_v50 = vld [vmem:[#allocation2 + $0x54] sm:$0x1]  ;;  %v1876_v54 = vrot.slane %v1875_v51, 4 }
 0x14c   : > { %3379 = vmatprep.subr.bf16.mxu0 %v3501_v53 }
 0x14d   : > { %3288 = vmatmul.mubr.bf16.vlgmr.msra.gmra.mxu1 %v3499_v56 }
 0x14e   : > { %3312 = vmatpush3.bf16.msra.mxu1 %v3500_v52  ;;  %3327 = vmatprep.mubr.bf16.mxu1 %v3502_v58  ;;  %v1878_v52 = vshll.u32 %v1839_v50, 16 }
 0x14f   : > { %3380 = vmatpush3.bf16.msra.mxu0 %v3501_v53  ;;  %3313 = vmatprep.subr.bf16.mxu1 %v3503_v57  ;;  %v3521_v53 = vld [vmem:[%s4049_s3 + $0x1c0] sm:$0xff]  }
 0x150   : > { %3381 = vmatprep.subr.bf16.mxu0 %v3504_v59  ;;  %v1880_v55 = vrot.slane %v1878_v52, 5 }
 0x152   : > { %3314 = vmatpush3.bf16.msra.mxu1 %v3503_v57  ;;  %v1881_v56 = vsel %vm3798_vm3, %v1876_v54, %v1880_v55 }
 0x153   : > { %3382 = vmatpush3.bf16.msra.mxu0 %v3504_v59  ;;  %3315 = vmatprep.subr.bf16.mxu1 %v3505_v62  ;;  %v2836_v57 = vcombine.low %v1881_v56, %v1881_v56 }
 0x154   : > { %3383 = vmatprep.subr.bf16.mxu0 %v3506_v63 }
 0x156   : > { %3316 = vmatpush3.bf16.msra.mxu1 %v3505_v62  ;;  %v3524_v62 = vld [vmem:[%s4051_s5 + $0x78] sm:$0xff]  }
 0x157   : > { %3384 = vmatpush3.bf16.msra.mxu0 %v3506_v63  ;;  %3317 = vmatprep.subr.bf16.mxu1 %v3507_v2  ;;  %v3559_v63 = vmov 0.0  }
 0x158   : > { %3385 = vmatprep.subr.bf16.mxu0 %v3508_v4 }
 0x15a   : > { %3318 = vmatpush3.bf16.msra.mxu1 %v3507_v2 }
 0x15b   : > { %3386 = vmatpush3.bf16.msra.mxu0 %v3508_v4  ;;  %3319 = vmatprep.subr.bf16.mxu1 %v3509_v7 }
 0x15c   : > { %3391 = vmatprep.subr.bf16.mxu0 %v3559_v63 }
 0x15e   : > { %3388 = vmatmul.mubr.bf16.vlgmr.msra.gmra.mxu0 %v2862_v16  ;;  %3320 = vmatpush3.bf16.msra.mxu1 %v3509_v7  ;;  %v3530_v7 = vld [vmem:[%s4051_s5 + $0x68] sm:$0xff]  }
 0x15f   : > { %3321 = vmatprep.subr.bf16.mxu1 %v3510_v13  ;;  %3392 = vmatpush3.bf16.msra.mxu0 %v3522_v61 }
 0x160   : > { %3393 = vmatprep.subr.bf16.mxu0 %v3559_v63  ;;  %3407 = vmatprep.mubr.msk.bf16.mxu0 %vm3560_vm4, %v3559_v63 }
 0x162   : > { %3322 = vmatpush3.bf16.msra.mxu1 %v3510_v13 }
 0x163   : > { %3323 = vmatprep.subr.bf16.mxu1 %v3511_v19  ;;  %3394 = vmatpush3.bf16.msra.mxu0 %v3523_v0 }
 0x164   : > { %3395 = vmatprep.subr.bf16.mxu0 %v3559_v63 }
 0x166   : > { %3324 = vmatpush3.bf16.msra.mxu1 %v3511_v19 }
 0x167   : > { %3325 = vmatprep.subr.bf16.mxu1 %v3512_v25  ;;  %3396 = vmatpush3.bf16.msra.mxu0 %v3526_v1 }
 0x168   : > { %3397 = vmatprep.subr.bf16.mxu0 %v3559_v63 }
 0x16a   : > { %3326 = vmatpush3.bf16.msra.mxu1 %v3512_v25  ;;  %v3545_v25 = vld [vmem:[%s4051_s5 + $0x40] sm:$0xff]  }
 0x16b   : > { %3351 = vmatprep.subr.bf16.mxu1 %v3514_v31  ;;  %3398 = vmatpush3.bf16.msra.mxu0 %v3529_v10 }
 0x16c   : > { %3399 = vmatprep.subr.bf16.mxu0 %v3559_v63 }
 0x16d   : > { %3328 = vmatmul.mubr.bf16.vlgmr.msra.gmra.mxu1 %v3513_v38 }
 0x16e   : > { %3352 = vmatpush3.bf16.msra.mxu1 %v3514_v31  ;;  %3367 = vmatprep.mubr.bf16.mxu1 %v2835_v40 }
 0x16f   : > { %3353 = vmatprep.subr.bf16.mxu1 %v3515_v30  ;;  %3400 = vmatpush3.bf16.msra.mxu0 %v3532_v14 }
 0x170   : > { %3401 = vmatprep.subr.bf16.mxu0 %v3559_v63 }
 0x172   : > { %3354 = vmatpush3.bf16.msra.mxu1 %v3515_v30 }
 0x173   : > { %3355 = vmatprep.subr.bf16.mxu1 %v3516_v36  ;;  %3402 = vmatpush3.bf16.msra.mxu0 %v3535_v17 }
 0x174   : > { %3403 = vmatprep.subr.bf16.mxu0 %v3559_v63 }
 0x176   : > { %3356 = vmatpush3.bf16.msra.mxu1 %v3516_v36 }
 0x177   : > { %3357 = vmatprep.subr.bf16.mxu1 %v3517_v34  ;;  %3404 = vmatpush3.bf16.msra.mxu0 %v3538_v23 }
 0x178   : > { %3405 = vmatprep.subr.bf16.mxu0 %v3559_v63 }
 0x17a   : > { %3358 = vmatpush3.bf16.msra.mxu1 %v3517_v34 }
 0x17b   : > { %3359 = vmatprep.subr.bf16.mxu1 %v3518_v42  ;;  %3406 = vmatpush3.bf16.msra.mxu0 %v3541_v26 }
 0x17e   : > { %3360 = vmatpush3.bf16.msra.mxu1 %v3518_v42 }
 0x17f   : > { %3361 = vmatprep.subr.bf16.mxu1 %v3519_v45 }
 0x182   : > { %3362 = vmatpush3.bf16.msra.mxu1 %v3519_v45 }
 0x183   : > { %3363 = vmatprep.subr.bf16.mxu1 %v3520_v48 }
 0x186   : > { %3364 = vmatpush3.bf16.msra.mxu1 %v3520_v48 }
 0x187   : > { %3365 = vmatprep.subr.bf16.mxu1 %v3521_v53 }
 0x18a   : > { %3366 = vmatpush3.bf16.msra.mxu1 %v3521_v53 }
 0x18b   : > { %3146 = vmatprep.subr.bf16.mxu1 %v3524_v62 }
 0x18d   : > { %3368 = vmatmul.mubr.bf16.vlgmr.msra.gmra.mxu1 %v2836_v57 }
 0x18e   : > { %3147 = vmatpush3.bf16.msra.mxu1 %v3525_v49 }
 0x18f   : > { %3148 = vmatprep.subr.bf16.mxu1 %v3527_v3 }
 0x192   : > { %3149 = vmatpush3.bf16.msra.mxu1 %v3528_v5 }
 0x193   : > { %3150 = vmatprep.subr.bf16.mxu1 %v3530_v7 }
 0x196   : > { %3151 = vmatpush3.bf16.msra.mxu1 %v3531_v8 }
 0x197   : > { %3152 = vmatprep.subr.bf16.mxu1 %v3533_v9 }
 0x19a   : > { %3153 = vmatpush3.bf16.msra.mxu1 %v3534_v11 }
 0x19b   : > { %3154 = vmatprep.subr.bf16.mxu1 %v3536_v12 }
 0x19e   : > { %3155 = vmatpush3.bf16.msra.mxu1 %v3537_v15 }
 0x19f   : > { %3156 = vmatprep.subr.bf16.mxu1 %v3539_v18 }
 0x1a2   : > { %3157 = vmatpush3.bf16.msra.mxu1 %v3540_v20 }
 0x1a3   : > { %3158 = vmatprep.subr.bf16.mxu1 %v3542_v21 }
 0x1a6   : > { %3159 = vmatpush3.bf16.msra.mxu1 %v3543_v24 }
 0x1a7   : > { %3160 = vmatprep.subr.bf16.mxu1 %v3545_v25 }
 0x1aa   : > { %3161 = vmatpush3.bf16.msra.mxu1 %v3546_v27 }
 0x1ae   : > { %v3946_v58 = vpop.f32.mrf.mxu0 }
 0x1b0   : > { %v3948_v59 = vpop.f32.mrf.mxu0 }
 0x1b2   : > { %v3270_v60 = vpop.f32.mrf.mxu0 }
 0x1b4   : > { %v1256_v13 = vpop.f32.mrf.mxu0 }
 0x1cd   : > { %v3229_v2 = vpop.f32.mrf.mxu1 }
 0x1cf   : > { %v1020_v4 = vpop.f32.mrf.mxu1 }
 0x1d1   : > { %v3230_v6 = vpop.f32.mrf.mxu1 }
 0x1d3   : > { %v1023_v28 = vpop.f32.mrf.mxu1 }
 0x1dd   : > { %v3309_v16 = vpop.f32.mrf.mxu0 }
 0x1df   : > { %v1513_v19 = vpop.f32.mrf.mxu0 }
 0x1e1   : > { %v3310_v22 = vpop.f32.mrf.mxu0 }
 0x1e3   : > { %v1516_v36 = vpop.f32.mrf.mxu0 }
 0x1ed   : > { %v3249_v29 = vpop.f32.mrf.mxu1 }
 0x1ee   : > { %v1135_v31 = vadd.f32 %v3249_v29, %v3229_v2 }
 0x1ef   : > { %v1126_v32 = vpop.f32.mrf.mxu1 }
 0x1f0   : > { %v1127_v33 = vadd.f32 %v1126_v32, %v1020_v4  ;;  %v1269_v35 = vadd.f32 %v3946_v58, %v1135_v31  ;;  %v2871_v4 = vld [vmem:[%s4050_s4] ss:$0 sm:$0xff]  ;;  %v2493_v31 = vlaneseq }
 0x1f1   : > { %v3250_v37 = vpop.f32.mrf.mxu1 }
 0x1f2   : > { %v1267_v38 = vadd.f32 %v3948_v59, %v1127_v33 }
 0x1f3   : > { %v1129_v39 = vpop.f32.mrf.mxu1 }
 0x1f4   : > { %v1130_v30 = vadd.f32 %v1129_v39, %v1023_v28  ;;  %v2873_v28 = vld [vmem:[%s4052_s6] ss:$0 sm:$0xff] }
 0x1f6   : > { %v1268_v40 = vadd.f32 %v1256_v13, %v1130_v30  ;;  %v2494_v30 = vand.u32 127, %v2493_v31 }
 0x1f8   : > { %vm2495_vm5 = vcmp.lt.s32.totalorder %v2494_v30, 32 }
 0x1fe   : > { %v3349_v34 = vpop.f32.mrf.mxu0 }
 0x200   : > { %v1817_v41 = vpop.f32.mrf.mxu0 }
 0x202   : > { %v3350_v42 = vpop.f32.mrf.mxu0 }
 0x204   : > { %v1820_v54 = vpop.f32.mrf.mxu0 }
 0x20d   : > { %v3289_v43 = vpop.f32.mrf.mxu1 }
 0x20e   : > { %v1399_v44 = vadd.f32 %v3289_v43, %v1269_v35 }
 0x20f   : > { %v1383_v45 = vpop.f32.mrf.mxu1 }
 0x210   : > { %v1397_v46 = vadd.f32 %v1383_v45, %v1267_v38  ;;  %v1529_v47 = vadd.f32 %v3309_v16, %v1399_v44 }
 0x211   : > { %v3290_v48 = vpop.f32.mrf.mxu1 }
 0x212   : > { %v1527_v50 = vadd.f32 %v1513_v19, %v1397_v46 }
 0x213   : > { %v1386_v51 = vpop.f32.mrf.mxu1 }
 0x214   : > { %v1398_v52 = vadd.f32 %v1386_v51, %v1268_v40 }
 0x216   : > { %v1528_v53 = vadd.f32 %v1516_v36, %v1398_v52  ;;  %v2491_v36 = vld [vmem:[%s4053_s7] sm:$0xff] }
 0x21e   : > { %v3389_v55 = vpop.f32.mrf.mxu0 }
 0x220   : > { %v2159_v56 = vpop.f32.mrf.mxu0 }
 0x222   : > { %v3390_v57 = vpop.f32.mrf.mxu0 }
 0x224   : > { %v2162_v15 = vpop.f32.mrf.mxu0 }
 0x22d   : > { %v3329_v58 = vpop.f32.mrf.mxu1 }
 0x22e   : > { %v1659_v59 = vadd.f32 %v3329_v58, %v1529_v47 }
 0x22f   : > { %v1643_v60 = vpop.f32.mrf.mxu1 }
 0x230   : > { %v1657_v61 = vadd.f32 %v1643_v60, %v1527_v50  ;;  %v1833_v62 = vadd.f32 %v3349_v34, %v1659_v59 }
 0x231   : > { %v3330_v63 = vpop.f32.mrf.mxu1 }
 0x232   : > { %v1831_v49 = vadd.f32 %v1817_v41, %v1657_v61 }
 0x233   : > { %v1646_v0 = vpop.f32.mrf.mxu1 }
 0x234   : > { %v1658_v2 = vadd.f32 %v1646_v0, %v1528_v53  ;;  %v2901_v53 = vld [vmem:[%s4054_s8] ss:$0 sm:$0xff] }
 0x236   : > { %v1832_v11 = vadd.f32 %v1820_v54, %v1658_v2 }
 0x24d   : > { %v3369_v1 = vpop.f32.mrf.mxu1 }
 0x24e   : > { %v2004_v3 = vadd.f32 %v3369_v1, %v1833_v62 }
 0x24f   : > { %v1988_v5 = vpop.f32.mrf.mxu1 }
 0x250   : > { %v2175_v6 = vadd.f32 %v3389_v55, %v2004_v3  ;;  %v2002_v7 = vadd.f32 %v1988_v5, %v1831_v49  ;;  %v2902_v55 = vld [vmem:[%s4055_s9] ss:$0 sm:$0xff] }
 0x251   : > { %v3370_v8 = vpop.f32.mrf.mxu1 }
 0x252   : > { %v2185_v9 = vadd.f32 %v2871_v4, %v2175_v6  ;;  %v2173_v10 = vadd.f32 %v2159_v56, %v2002_v7 }
 0x253   : > { %v1991_v12 = vpop.f32.mrf.mxu1 }
 0x254   : > { %v2188_v13 = vmax.f32 %v2185_v9, 0.0  ;;  %v2003_v14 = vadd.f32 %v1991_v12, %v1832_v11  ;;  %v2183_v17 = vadd.f32 %v2871_v4, %v2173_v10 }
 0x256   : > { %v2190_v16 = vpack.c.bf16 %v2188_v13, %v2188_v13  ;;  %v2174_v18 = vadd.f32 %v2162_v15, %v2003_v14  ;;  %v2186_v20 = vmax.f32 %v2183_v17, 0.0 }
 0x258   : > { %2197 = vst [vmem:[#allocation3 + $0x8] sm:$0xf] %v2190_v16  ;;  %v2184_v19 = vadd.f32 %v2871_v4, %v2174_v18  ;;  %v3549_v22 = vpack.c.bf16 %v2186_v20, %v2186_v20 }
 0x25a   : > { %v2187_v21 = vmax.f32 %v2184_v19, 0.0 }
 0x25c   : > { %v3550_v23 = vpack.c.bf16 %v2187_v21, %v2187_v21 }
 0x25e   : > { %2442 = vmatprep.mubr.bf16.mxu1 %v3550_v23 }
 0x25f   : > { %v3544_v24 = vld [vmem:[#allocation3 + $0x8] ss:$0 sps:$4 sm:$0xff]   ;;  %2443 = vmatmul.mubr.bf16.vlgmr.msra.gmra.mxu1 %v3549_v22 }
 0x260   : > { %3408 = vmatmul.mubr.bf16.vlgmr.msra.gmra.mxu0 %v3544_v24 }
 0x31f   : > { %v3162_v26 = vpop.f32.mrf.mxu1 }
 0x320   : > { %v2484_v25 = vpop.f32.mrf.mxu0 }
 0x321   : > { %v3163_v29 = vpop.f32.mrf.mxu1 }
 0x322   : > { %v3409_v27 = vpop.f32.mrf.mxu0  ;;  %v3164_v32 = vadd.f32 %v3163_v29, %v3162_v26 }
 0x323   : > { %v3165_v35 = vpop.f32.mrf.mxu1 }
 0x324   : > { %v2487_v33 = vpop.f32.mrf.mxu0  ;;  %v2445_v37 = vadd.f32 %v3164_v32, %v2873_v28 }
 0x325   : > { %v3166_v39 = vpop.f32.mrf.mxu1 }
 0x326   : > { %v3410_v38 = vpop.f32.mrf.mxu0  ;;  %v2485_v40 = vadd.f32 %v2484_v25, %v2445_v37 }
 0x328   : > { %v2490_v34 = vmul.f32 5.656854, %v2485_v40 }
 0x32a   : > { %v2492_v41 = vadd.f32 %v2491_v36, %v2490_v34 }
 0x32c   : > { %v2496_v42 = vsel %vm2495_vm5, %v2492_v41, 0.0 }
 0x32d   : > { %2497 = vadd.xlane.f32.xlu0 %v2496_v42 }
 0x3b6   : > { %v2498_v43 = vpop.xlane.xlu0 %2497 }
 0x3b7   : > { %v2499_v44 = vmul.f32 0.03125, %v2498_v43 }
 0x3b9   : > { %v2500_v45 = vsub.f32 %v2492_v41, %v2499_v44 }
 0x3bb   : > { %v2501_v46 = vsel %vm2495_vm5, %v2500_v45, 0.0 }
 0x3bc   : > { %v2502_v47 = vmul.f32 %v2501_v46, %v2501_v46 }
 0x3be   : > { %2503 = vadd.xlane.f32.xlu0 %v2502_v47 }
 0x447   : > { %v2504_v48 = vpop.xlane.xlu0 %2503 }
 0x448   : > { %v2505_v50 = vmul.f32 0.03125, %v2504_v48 }
 0x44a   : > { %v2506_v51 = vadd.f32 1e-12, %v2505_v50 }
 0x44c   : > { %3547 = vrsqrt.f32 %v2506_v51 }
 0x459   : > { %v3548_v52 = vpop.eup %3547 }
 0x45a   : > { %v2508_v54 = vmul.f32 %v3548_v52, %v2501_v46 }
 0x45c   : > { %v2516_v56 = vmul.f32 %v2901_v53, %v2508_v54 }
 0x45e   : > { %v2524_v57 = vadd.f32 %v2902_v55, %v2516_v56 }
 0x460   : > { %2525 = vst [vmem:[%s357_s30] sm:$0xff] %v2524_v57 }
 0x461 PF: > { %s20_s13 = sadd.s32 1, %s3557_s13  }
 0x462   : > { %p17_p4 = scmp.ge.s32.totalorder %s20_s13, 4  }
 0x464   :  { %19 = sbr.rel (!%p17_p4) target bundleno = 1 (0x1), region = 103 }

</bundles_post_ra>
